<compile_context>
chip_gen: v7x
topology: tpu7x:2x2x1
jax: 0.10.0
libtpu: 0.0.40
codegen_flags: <defaults>
</compile_context>

<pallas_src>
import functools

import jax
import jax.numpy as jnp
from jax import lax
from jax.experimental import pallas as pl
from jax.experimental.pallas import tpu as pltpu

STATE_SIZE = (3, 18, 18)
ACTION_SIZE = 3

# ---- fixed conv geometry (18x18 -> conv(4,s2) -> 8x8 -> conv(3) -> 6x6) -------------
_C = STATE_SIZE[0]
_S2D_LANES = 9 * 4 * _C      # 108 space-to-depth lanes per spatial row
_IN_W = 128                  # s2d lanes padded to 128
_C1_IN = 2 * _IN_W           # conv1 patch lanes (two kernel-height taps)       = 256
_C1_OUT = 8 * 32             # conv1 output lanes (ow1 in [0,8), oc in [0,32))  = 256
_C2_IN = 3 * _C1_OUT         # conv2 patch lanes (three kernel-height taps)     = 768
_C2_OUT = 8 * 32             # conv2 output lanes (ow2 padded to 8, oc)         = 256
_FC_IN = 6 * _C2_OUT         # fc1 lanes: valid oh2 in [0,6) x conv2 lanes      = 1536
_HEAD_W = 16                 # packed head block: p1|Q1|V1|p2|Q2|V2|cls|pad


def _round_up(v, m):
    return ((v + m - 1) // m) * m


def _dims(hidden):
    xw = _round_up(2 * hidden + ACTION_SIZE + 2, 128)   # LSTM input lanes
    gw = _round_up(4 * hidden, 128)                     # LSTM gate / head lanes
    out_w = _round_up(_HEAD_W + 2 * hidden, 128)        # packed output lanes
    return xw, gw, out_w


# --------------------------------------------------------------------------------------
# In-kernel helpers (all f32 / VPU+EUP)
# --------------------------------------------------------------------------------------
def _elu(x):
    return jnp.where(x > 0, x, jnp.exp(jnp.minimum(x, 0.0)) - 1.0)


def _sigmoid(x):
    return 1.0 / (1.0 + jnp.exp(-x))


# --------------------------------------------------------------------------------------
# Fused kernel
# --------------------------------------------------------------------------------------
def _fused_kernel(s2d_ref, extra_ref, h0_ref, c0_ref,
                  w256_ref, wf1_ref, wlh_ref, bias_ref,
                  out_ref, a1_ref, a2_ref, *, batch, hidden):
    f32 = jnp.float32
    B = batch
    R = 9 * B                      # rows are (spatial_row i, batch b) -> i*B + b
    xw, gw, _ = _dims(hidden)
    cdt = w256_ref.dtype           # matmul operand dtype (bf16 by default)

    # ---- conv1 (k=4, s=2) as one MXU matmul ------------------------------------------
    # kernel-height pair gathered with two offset reads of the (R+B)-row padded input.
    patches1 = jnp.concatenate(
        [s2d_ref[0:R, :], s2d_ref[B:R + B, :]], axis=1).astype(cdt)          # (R, 256)
    a1 = _elu(jnp.dot(patches1, w256_ref[0:_C1_IN, :],
                      preferred_element_type=f32) + bias_ref[0:1, 0:_C1_OUT])

    # ---- conv2 (k=3, s=1): kernel-height gather via offset reads of a VMEM scratch ---
    a1_ref[R:R + 2 * B, :] = jnp.zeros((2 * B, _C1_OUT), f32)   # unused tail rows
    a1_ref[0:R, :] = a1
    patches2 = jnp.concatenate(
        [a1, a1_ref[B:R + B, :], a1_ref[2 * B:R + 2 * B, :]], axis=1).astype(cdt)
    a2 = _elu(jnp.dot(patches2, w256_ref[_C1_IN:_C1_IN + _C2_IN, :],
                      preferred_element_type=f32) + bias_ref[1:2, 0:_C2_OUT])
    a2_ref[...] = a2                                                          # (R, 256)

    # ---- fc1: flatten the valid rows (oh2 < 6) into lanes, one dense matmul ----------
    fc_in = jnp.concatenate(
        [a2_ref[r * B:(r + 1) * B, :] for r in range(6)], axis=1).astype(cdt)  # (B,1536)
    x_fc = _elu(jnp.dot(fc_in, wf1_ref[...], preferred_element_type=f32)
                + bias_ref[2:3, 0:hidden])                                    # (B, H)

    # ---- LSTMCell: one matmul over [x | h0 | extra | pad] ----------------------------
    pieces = [x_fc, h0_ref[...], extra_ref[...]]
    pad = xw - (2 * hidden + ACTION_SIZE + 2)
    if pad:
        pieces.append(jnp.zeros((B, pad), f32))
    xh = jnp.concatenate(pieces, axis=1).astype(cdt)                          # (B, xw)
    gates = jnp.dot(xh, wlh_ref[0:xw, :],
                    preferred_element_type=f32) + bias_ref[3:4, 0:gw]         # (B, gw)
    i_g = _sigmoid(gates[:, 0:hidden])
    f_g = _sigmoid(gates[:, hidden:2 * hidden])
    g_g = jnp.tanh(gates[:, 2 * hidden:3 * hidden])
    o_g = _sigmoid(gates[:, 3 * hidden:4 * hidden])
    c_new = f_g * c0_ref[...] + i_g * g_g
    h_new = o_g * jnp.tanh(c_new)

    # ---- heads: one matmul for [actor1 | critic1 | actor2 | critic2 | class] ---------
    t = jnp.dot(h_new.astype(cdt), wlh_ref[xw:xw + hidden, :],
                preferred_element_type=f32) + bias_ref[4:5, 0:gw]             # (B, gw)

    def softmax3(logits):
        m = jnp.max(logits, axis=1, keepdims=True)
        e = jnp.exp(logits - m)
        p = e / jnp.sum(e, axis=1, keepdims=True)   # exact denominator (torch parity)
        return jnp.minimum(p, 1.0)                  # torch .clamp(max=1-1e-20): no-op in f32

    p1 = softmax3(t[:, 0:3])
    q1 = t[:, 3:6]
    v1 = jnp.sum(q1 * p1, axis=1, keepdims=True)
    p2 = softmax3(t[:, 6:9])
    q2 = t[:, 9:12]
    v2 = jnp.sum(q2 * p2, axis=1, keepdims=True)
    cls = _sigmoid(t[:, 12:13])

    # ---- pack output: 16-lane head block + h + c at 16-aligned lane offsets ----------
    head = jnp.concatenate(
        [p1, q1, v1, p2, q2, v2, cls, jnp.zeros((B, 1), f32)], axis=1)        # (B, 16)
    out_ref[...] = jnp.zeros(out_ref.shape, f32)
    out_ref[:, 0:_HEAD_W] = head
    out_ref[:, _HEAD_W:_HEAD_W + hidden] = h_new
    out_ref[:, _HEAD_W + hidden:_HEAD_W + 2 * hidden] = c_new


# --------------------------------------------------------------------------------------
# Parameters (deterministic test values, PyTorch layouts)
# --------------------------------------------------------------------------------------
def init_params(key, hidden):
    C = STATE_SIZE[0]
    ks = jax.random.split(key, 10)

    def rn(k, shape, scale=0.1):
        return scale * jax.random.normal(k, shape, dtype=jnp.float32)

    in_lstm = hidden + ACTION_SIZE + 2
    p = {
        "w_conv1": rn(ks[0], (32, C, 4, 4)),        # (OC, IC, KH, KW)
        "b_conv1": jnp.zeros((32,), jnp.float32),
        "w_conv2": rn(ks[1], (32, 32, 3, 3)),
        "b_conv2": jnp.zeros((32,), jnp.float32),
        "w_fc1": rn(ks[2], (hidden, 1152)),         # torch flatten order (oc, oh2, ow2)
        "b_fc1": jnp.zeros((hidden,), jnp.float32),
        "w_ih": rn(ks[3], (4 * hidden, in_lstm)),   # torch LSTMCell layout (i, f, g, o)
        "w_hh": rn(ks[4], (4 * hidden, hidden)),
        "w_a1": rn(ks[5], (ACTION_SIZE, hidden)),
        "b_a1": jnp.zeros((ACTION_SIZE,), jnp.float32),
        "w_c1": rn(ks[6], (ACTION_SIZE, hidden)),
        "b_c1": jnp.zeros((ACTION_SIZE,), jnp.float32),
        "w_a2": rn(ks[7], (ACTION_SIZE, hidden)),
        "b_a2": jnp.zeros((ACTION_SIZE,), jnp.float32),
        "w_c2": rn(ks[8], (ACTION_SIZE, hidden)),
        "b_c2": jnp.zeros((ACTION_SIZE,), jnp.float32),
        "w_cls": rn(ks[9], (1, hidden)),
        "b_cls": jnp.zeros((1,), jnp.float32),
    }
    # LSTM biases: zeros except forget-gate slice set to 1 on BOTH bias_ih and bias_hh
    # (as in the PyTorch init loop) -> combined forget bias = 2.
    b_ih = jnp.zeros((4 * hidden,), jnp.float32).at[hidden:2 * hidden].set(1.0)
    b_hh = jnp.zeros((4 * hidden,), jnp.float32).at[hidden:2 * hidden].set(1.0)
    p["b_lstm"] = b_ih + b_hh
    return p


# --------------------------------------------------------------------------------------
# One-time weight repacking into 4 lane-padded slabs (hoisted out of the forward)
# --------------------------------------------------------------------------------------
def prepare_params(params, hidden, weight_dtype=jnp.bfloat16):
    C = STATE_SIZE[0]
    f32 = jnp.float32
    xw, gw, _ = _dims(hidden)

    # ---- conv1 -> width-Toeplitz (256, 256) -----------------------------------------
    # input lane = a*128 + j*(4C) + r*(2C) + s*C + c  (a: kh pair, j: s2d column,
    # r/s: row/col parity, c: in channel); output lane = ow1*32 + oc.
    w1 = params["w_conv1"].astype(f32)
    in_idx = jnp.arange(_C1_IN)
    a_ = in_idx // _IN_W
    rem = in_idx % _IN_W
    j_ = rem // (4 * C)
    r_ = (rem // (2 * C)) % 2
    s_ = (rem // C) % 2
    c_ = rem % C
    live1 = rem < _S2D_LANES
    out_idx = jnp.arange(_C1_OUT)
    ow1 = out_idx // 32
    oc1 = out_idx % 32
    kh1 = 2 * a_ + r_
    dw1 = j_[:, None] - ow1[None, :]
    kw1 = 2 * dw1 + s_[:, None]
    valid1 = (dw1 >= 0) & (dw1 <= 1) & live1[:, None]
    vals1 = w1[oc1[None, :], c_[:, None],
               jnp.broadcast_to(kh1[:, None], dw1.shape), jnp.clip(kw1, 0, 3)]
    w1big = jnp.where(valid1, vals1, 0.0)                                   # (256, 256)

    # ---- conv2 -> width-Toeplitz (768, 256) -----------------------------------------
    # input lane = kh*256 + ow1*32 + ci ; output lane = ow2*32 + oc (ow2>=6 zero-pad).
    w2 = params["w_conv2"].astype(f32)
    in_idx = jnp.arange(_C2_IN)
    kh2 = in_idx // _C1_OUT
    ow1b = (in_idx // 32) % 8
    ci = in_idx % 32
    out_idx = jnp.arange(_C2_OUT)
    ow2 = out_idx // 32
    oc2 = out_idx % 32
    dw2 = ow1b[:, None] - ow2[None, :]
    valid2 = (dw2 >= 0) & (dw2 <= 2) & (ow2[None, :] < 6)
    vals2 = w2[oc2[None, :], ci[:, None],
               jnp.broadcast_to(kh2[:, None], dw2.shape), jnp.clip(dw2, 0, 2)]
    w2big = jnp.where(valid2, vals2, 0.0)                                   # (768, 256)

    w256 = jnp.concatenate([w1big, w2big], axis=0).astype(weight_dtype)     # (1024, 256)

    # ---- fc1 -> dense (1536, hidden); rows ordered (oh2 in [0,6), ow2 in [0,8), oc) --
    wf1t = params["w_fc1"].astype(f32).T                                    # (1152, H)
    k_idx = jnp.arange(_FC_IN)
    oh2k = k_idx // _C2_OUT
    ow2k = (k_idx // 32) % 8
    ock = k_idx % 32
    validf = ow2k < 6
    flat = ock * 36 + oh2k * 6 + jnp.clip(ow2k, 0, 5)
    wf1big = jnp.where(validf[:, None], wf1t[flat, :], 0.0).astype(weight_dtype)

    # ---- LSTM + heads -> one (xw + hidden, gw) slab ----------------------------------
    w_ih = params["w_ih"].astype(f32)        # (4H, H + 5): cols 0:H -> x, H:H+5 -> extra
    w_hh = params["w_hh"].astype(f32)        # (4H, H)
    wl = jnp.zeros((xw, gw), f32)
    wl = wl.at[0:hidden, 0:4 * hidden].set(w_ih[:, 0:hidden].T)
    wl = wl.at[hidden:2 * hidden, 0:4 * hidden].set(w_hh.T)
    wl = wl.at[2 * hidden:2 * hidden + ACTION_SIZE + 2,
               0:4 * hidden].set(w_ih[:, hidden:].T)
    whead = jnp.concatenate([params["w_a1"].T, params["w_c1"].T,
                             params["w_a2"].T, params["w_c2"].T,
                             params["w_cls"].T], axis=1).astype(f32)        # (H, 13)
    wh = jnp.zeros((hidden, gw), f32).at[:, 0:4 * ACTION_SIZE + 1].set(whead)
    wlh = jnp.concatenate([wl, wh], axis=0).astype(weight_dtype)            # (xw+H, gw)

    # ---- biases -> one f32 slab -------------------------------------------------------
    bw = max(256, gw)
    bias = jnp.zeros((8, bw), f32)
    bias = bias.at[0, 0:_C1_OUT].set(jnp.tile(params["b_conv1"], 8))
    bias = bias.at[1, 0:6 * 32].set(jnp.tile(params["b_conv2"], 6))
    bias = bias.at[2, 0:hidden].set(params["b_fc1"])
    bias = bias.at[3, 0:4 * hidden].set(params["b_lstm"])
    bhead = jnp.concatenate([params["b_a1"], params["b_c1"], params["b_a2"],
                             params["b_c2"], params["b_cls"]])
    bias = bias.at[4, 0:4 * ACTION_SIZE + 1].set(bhead)

    return {"w256": w256, "wf1": wf1big, "wlh": wlh, "bias": bias}


# --------------------------------------------------------------------------------------
# Forward pass (module semantics: single step, returns (p1, Q1, V1, p2, Q2, V2, cls, h))
# --------------------------------------------------------------------------------------
def actor_critic_forward(prep, x, h, hidden):
    C, H, W = STATE_SIZE
    B = x.shape[0]
    state_size = C * H * W
    h0, c0 = h
    _, _, out_w = _dims(hidden)
    R = 9 * B

    assert x.shape[1] >= state_size + ACTION_SIZE + 2
    assert prep["wf1"].shape == (_FC_IN, hidden)
    assert _HEAD_W + 2 * hidden <= out_w          # keep kernel/wrapper layout in sync

    # Space-to-depth (stride-2 parity split); rows ordered (spatial_row, batch) so the
    # kernel-height taps are plain +B / +2B row offsets.  One extra zero row block and
    # lane padding to 128 keep every in-kernel access unit-stride and unmasked.
    state = x[:, :state_size].reshape(B, C, 9, 2, 9, 2)                 # (b,c,i,r,j,s)
    s2d = jnp.transpose(state, (2, 0, 4, 3, 5, 1)).reshape(R, _S2D_LANES)
    s2d = jnp.pad(s2d, ((0, B), (0, _IN_W - _S2D_LANES)))               # (R+B, 128)
    extra = x[:, state_size:state_size + ACTION_SIZE + 2]               # (B, 5)

    packed = pl.pallas_call(
        functools.partial(_fused_kernel, batch=B, hidden=hidden),
        out_shape=jax.ShapeDtypeStruct((B, out_w), jnp.float32),
        in_specs=[pl.BlockSpec(memory_space=pltpu.MemorySpace.VMEM)] * 8,
        out_specs=pl.BlockSpec(memory_space=pltpu.MemorySpace.VMEM),
        scratch_shapes=[pltpu.VMEM((R + 2 * B, _C1_OUT), jnp.float32),   # conv1 out
                        pltpu.VMEM((R, _C2_OUT), jnp.float32)],          # conv2 out
    )(s2d, extra, h0, c0, prep["w256"], prep["wf1"], prep["wlh"], prep["bias"])

    policy1 = packed[:, 0:3]
    Q1 = packed[:, 3:6]
    V1 = packed[:, 6]
    policy2 = packed[:, 7:10]
    Q2 = packed[:, 10:13]
    V2 = packed[:, 13]
    cls = packed[:, 14:15]
    h_new = packed[:, _HEAD_W:_HEAD_W + hidden]
    c_new = packed[:, _HEAD_W + hidden:_HEAD_W + 2 * hidden]
    return policy1, Q1, V1, policy2, Q2, V2, cls, (h_new, c_new)


# --------------------------------------------------------------------------------------
# Pure-JAX reference (mirrors the PyTorch module) for parity checking
# --------------------------------------------------------------------------------------
def reference_forward(params, x, h):
    C, H, W = STATE_SIZE
    B = x.shape[0]
    state_size = C * H * W
    state = x[:, :state_size].reshape(B, C, H, W)
    extra = x[:, state_size:state_size + ACTION_SIZE + 2]
    h0, c0 = h

    def conv(inp, w, b, stride):
        out = lax.conv_general_dilated(inp, w, (stride, stride), "VALID",
                                       dimension_numbers=("NCHW", "OIHW", "NCHW"))
        return out + b[None, :, None, None]

    def elu(v):
        return jnp.where(v > 0, v, jnp.expm1(jnp.minimum(v, 0.0)))

    a1 = elu(conv(state, params["w_conv1"], params["b_conv1"], 2))
    a2 = elu(conv(a1, params["w_conv2"], params["b_conv2"], 1))
    x1 = elu(a2.reshape(B, -1) @ params["w_fc1"].T + params["b_fc1"])

    inp = jnp.concatenate([x1, extra], axis=1)
    gates = inp @ params["w_ih"].T + h0 @ params["w_hh"].T + params["b_lstm"]
    i_g, f_g, g_g, o_g = jnp.split(gates, 4, axis=1)
    i_g = jax.nn.sigmoid(i_g)
    f_g = jax.nn.sigmoid(f_g)
    g_g = jnp.tanh(g_g)
    o_g = jax.nn.sigmoid(o_g)
    c_new = f_g * c0 + i_g * g_g
    h_new = o_g * jnp.tanh(c_new)

    def head(w, b):
        return h_new @ w.T + b

    p1 = jax.nn.softmax(head(params["w_a1"], params["b_a1"]), axis=1)
    q1 = head(params["w_c1"], params["b_c1"])
    v1 = jnp.sum(q1 * p1, axis=1)
    p2 = jax.nn.softmax(head(params["w_a2"], params["b_a2"]), axis=1)
    q2 = head(params["w_c2"], params["b_c2"])
    v2 = jnp.sum(q2 * p2, axis=1)
    cls = jax.nn.sigmoid(head(params["w_cls"], params["b_cls"]))
    return p1, q1, v1, p2, q2, v2, cls, (h_new, c_new)


# --------------------------------------------------------------------------------------
if __name__ == "__main__":
    hidden_size = 32
    B = 2
    C, H, W = STATE_SIZE
    state_size = C * H * W

    key = jax.random.PRNGKey(0)
    k_par, k_x, k_h, k_c = jax.random.split(key, 4)

    params = init_params(k_par, hidden_size)
    x = jax.random.normal(k_x, (B, state_size + ACTION_SIZE + 2), dtype=jnp.float32)
    h0 = 0.1 * jax.random.normal(k_h, (B, hidden_size), dtype=jnp.float32)
    c0 = 0.1 * jax.random.normal(k_c, (B, hidden_size), dtype=jnp.float32)

    ref = reference_forward(params, x, (h0, c0))
    ref_flat = (*ref[:7], *ref[7])

    fwd = jax.jit(functools.partial(actor_critic_forward, hidden=hidden_size))

    # (1) f32-weight mode: validates the Toeplitz/layout logic against the reference.
    prep32 = prepare_params(params, hidden_size, weight_dtype=jnp.float32)
    out32 = fwd(prep32, x, (h0, c0))
    out32_flat = (*out32[:7], *out32[7])
    jax.block_until_ready(out32_flat)
    for got, want in zip(out32_flat, ref_flat):
        assert got.shape == want.shape
        assert float(jnp.max(jnp.abs(got - want))) < 2e-3

    # (2) bf16-weight mode (perf default): ~40% less weight DMA, MXU-native operands.
    prep16 = prepare_params(params, hidden_size, weight_dtype=jnp.bfloat16)
    out16 = fwd(prep16, x, (h0, c0))
    out16_flat = (*out16[:7], *out16[7])
    jax.block_until_ready(out16_flat)
    for got, want in zip(out16_flat, ref_flat):
        assert got.shape == want.shape
        assert bool(jnp.all(jnp.isfinite(got)))
        assert float(jnp.max(jnp.abs(got - want))) < 1e-1

    policy1, Q1, V1, policy2, Q2, V2, cls, (h_new, c_new) = out16
    assert policy1.shape == (B, ACTION_SIZE) and Q1.shape == (B, ACTION_SIZE)
    assert policy2.shape == (B, ACTION_SIZE) and Q2.shape == (B, ACTION_SIZE)
    assert V1.shape == (B,) and V2.shape == (B,)
    assert cls.shape == (B, 1)
    assert h_new.shape == (B, hidden_size) and c_new.shape == (B, hidden_size)

    print("KERNEL_OK")
</pallas_src>

<mosaic_0001>
module attributes {stable_mosaic.version = 11 : i64} {
  func.func @_fused_kernel(%arg0: memref<20x128xf32, #tpu.memory_space<vmem>>, %arg1: memref<2x5xf32, #tpu.memory_space<vmem>>, %arg2: memref<2x32xf32, #tpu.memory_space<vmem>>, %arg3: memref<2x32xf32, #tpu.memory_space<vmem>>, %arg4: memref<1024x256xf32, #tpu.memory_space<vmem>>, %arg5: memref<1536x32xf32, #tpu.memory_space<vmem>>, %arg6: memref<160x128xf32, #tpu.memory_space<vmem>>, %arg7: memref<8x256xf32, #tpu.memory_space<vmem>>, %arg8: memref<2x128xf32, #tpu.memory_space<vmem>>, %arg9: memref<22x256xf32, #tpu.memory_space<vmem>>, %arg10: memref<18x256xf32, #tpu.memory_space<vmem>>) attributes {dimension_semantics = [], scalar_prefetch = 0 : i64, scratch_operands = 2 : i64, tpu.core_type = #tpu.core_type<tc>} {
    %c0 = arith.constant 0 : index
    %c0_0 = arith.constant 0 : index
    %0 = vector.load %arg0[%c0, %c0_0] : memref<20x128xf32, #tpu.memory_space<vmem>>, vector<18x128xf32>
    %c2 = arith.constant 2 : index
    %c0_1 = arith.constant 0 : index
    %1 = vector.load %arg0[%c2, %c0_1] : memref<20x128xf32, #tpu.memory_space<vmem>>, vector<18x128xf32>
    %2 = tpu.concatenate %0, %1 in 1 : vector<18x128xf32>, vector<18x128xf32> -> vector<18x256xf32>
    %c0_2 = arith.constant 0 : index
    %c0_3 = arith.constant 0 : index
    %3 = vector.load %arg4[%c0_2, %c0_3] : memref<1024x256xf32, #tpu.memory_space<vmem>>, vector<256x256xf32>
    %cst = arith.constant dense<0.000000e+00> : vector<18x256xf32>
    %4 = tpu.matmul %2, %3, %cst {dimension_numbers = #tpu.dot_dimension_numbers<[1], [0], [0], [1], [0, 0, 1, 1], [], []>} : vector<18x256xf32>, vector<256x256xf32>, vector<18x256xf32> -> vector<18x256xf32>
    %c0_4 = arith.constant 0 : index
    %c0_5 = arith.constant 0 : index
    %5 = vector.load %arg7[%c0_4, %c0_5] : memref<8x256xf32, #tpu.memory_space<vmem>>, vector<1x256xf32>
    %6 = vector.broadcast %5 : vector<1x256xf32> to vector<18x256xf32>
    %7 = arith.addf %4, %6 : vector<18x256xf32>
    %cst_6 = arith.constant 0.000000e+00 : f32
    %8 = vector.broadcast %cst_6 : f32 to vector<18x256xf32>
    %9 = arith.cmpf ogt, %7, %8 : vector<18x256xf32>
    %cst_7 = arith.constant 0.000000e+00 : f32
    %10 = vector.broadcast %cst_7 : f32 to vector<18x256xf32>
    %11 = arith.minimumf %7, %10 : vector<18x256xf32>
    %12 = math.exp %11 : vector<18x256xf32>
    %cst_8 = arith.constant 1.000000e+00 : f32
    %13 = vector.broadcast %cst_8 : f32 to vector<18x256xf32>
    %14 = arith.subf %12, %13 : vector<18x256xf32>
    %15 = arith.select %9, %7, %14 : vector<18x256xi1>, vector<18x256xf32>
    %cst_9 = arith.constant 0.000000e+00 : f32
    %16 = vector.broadcast %cst_9 : f32 to vector<4x256xf32>
    %c18 = arith.constant 18 : index
    %c0_10 = arith.constant 0 : index
    %17 = vector.load %arg9[%c18, %c0_10] : memref<22x256xf32, #tpu.memory_space<vmem>>, vector<4x256xf32>
    tpu.vector_store %arg9[%c18, %c0_10], %16 {strides = array<i32>} : memref<22x256xf32, #tpu.memory_space<vmem>>, vector<4x256xf32>,
    %c0_11 = arith.constant 0 : index
    %c0_12 = arith.constant 0 : index
    %18 = vector.load %arg9[%c0_11, %c0_12] : memref<22x256xf32, #tpu.memory_space<vmem>>, vector<18x256xf32>
    tpu.vector_store %arg9[%c0_11, %c0_12], %15 {strides = array<i32>} : memref<22x256xf32, #tpu.memory_space<vmem>>, vector<18x256xf32>,
    %c2_13 = arith.constant 2 : index
    %c0_14 = arith.constant 0 : index
    %19 = vector.load %arg9[%c2_13, %c0_14] : memref<22x256xf32, #tpu.memory_space<vmem>>, vector<18x256xf32>
    %c4 = arith.constant 4 : index
    %c0_15 = arith.constant 0 : index
    %20 = vector.load %arg9[%c4, %c0_15] : memref<22x256xf32, #tpu.memory_space<vmem>>, vector<18x256xf32>
    %21 = tpu.concatenate %15, %19, %20 in 1 : vector<18x256xf32>, vector<18x256xf32>, vector<18x256xf32> -> vector<18x768xf32>
    %c256 = arith.constant 256 : index
    %c0_16 = arith.constant 0 : index
    %22 = vector.load %arg4[%c256, %c0_16] : memref<1024x256xf32, #tpu.memory_space<vmem>>, vector<768x256xf32>
    %cst_17 = arith.constant dense<0.000000e+00> : vector<18x256xf32>
    %23 = tpu.matmul %21, %22, %cst_17 {dimension_numbers = #tpu.dot_dimension_numbers<[1], [0], [0], [1], [0, 0, 1, 1], [], []>} : vector<18x768xf32>, vector<768x256xf32>, vector<18x256xf32> -> vector<18x256xf32>
    %c1 = arith.constant 1 : index
    %c0_18 = arith.constant 0 : index
    %24 = vector.load %arg7[%c1, %c0_18] : memref<8x256xf32, #tpu.memory_space<vmem>>, vector<1x256xf32>
    %25 = vector.broadcast %24 : vector<1x256xf32> to vector<18x256xf32>
    %26 = arith.addf %23, %25 : vector<18x256xf32>
    %cst_19 = arith.constant 0.000000e+00 : f32
    %27 = vector.broadcast %cst_19 : f32 to vector<18x256xf32>
    %28 = arith.cmpf ogt, %26, %27 : vector<18x256xf32>
    %cst_20 = arith.constant 0.000000e+00 : f32
    %29 = vector.broadcast %cst_20 : f32 to vector<18x256xf32>
    %30 = arith.minimumf %26, %29 : vector<18x256xf32>
    %31 = math.exp %30 : vector<18x256xf32>
    %cst_21 = arith.constant 1.000000e+00 : f32
    %32 = vector.broadcast %cst_21 : f32 to vector<18x256xf32>
    %33 = arith.subf %31, %32 : vector<18x256xf32>
    %34 = arith.select %28, %26, %33 : vector<18x256xi1>, vector<18x256xf32>
    %c0_22 = arith.constant 0 : index
    %c0_23 = arith.constant 0 : index
    %35 = vector.load %arg10[%c0_22, %c0_23] : memref<18x256xf32, #tpu.memory_space<vmem>>, vector<18x256xf32>
    tpu.vector_store %arg10[%c0_22, %c0_23], %34 {strides = array<i32>} : memref<18x256xf32, #tpu.memory_space<vmem>>, vector<18x256xf32>,
    %c0_24 = arith.constant 0 : index
    %c0_25 = arith.constant 0 : index
    %36 = vector.load %arg10[%c0_24, %c0_25] : memref<18x256xf32, #tpu.memory_space<vmem>>, vector<2x256xf32>
    %c2_26 = arith.constant 2 : index
    %c0_27 = arith.constant 0 : index
    %37 = vector.load %arg10[%c2_26, %c0_27] : memref<18x256xf32, #tpu.memory_space<vmem>>, vector<2x256xf32>
    %c4_28 = arith.constant 4 : index
    %c0_29 = arith.constant 0 : index
    %38 = vector.load %arg10[%c4_28, %c0_29] : memref<18x256xf32, #tpu.memory_space<vmem>>, vector<2x256xf32>
    %c6 = arith.constant 6 : index
    %c0_30 = arith.constant 0 : index
    %39 = vector.load %arg10[%c6, %c0_30] : memref<18x256xf32, #tpu.memory_space<vmem>>, vector<2x256xf32>
    %c8 = arith.constant 8 : index
    %c0_31 = arith.constant 0 : index
    %40 = vector.load %arg10[%c8, %c0_31] : memref<18x256xf32, #tpu.memory_space<vmem>>, vector<2x256xf32>
    %c10 = arith.constant 10 : index
    %c0_32 = arith.constant 0 : index
    %41 = vector.load %arg10[%c10, %c0_32] : memref<18x256xf32, #tpu.memory_space<vmem>>, vector<2x256xf32>
    %42 = tpu.concatenate %36, %37, %38, %39, %40, %41 in 1 : vector<2x256xf32>, vector<2x256xf32>, vector<2x256xf32>, vector<2x256xf32>, vector<2x256xf32>, vector<2x256xf32> -> vector<2x1536xf32>
    %c0_33 = arith.constant 0 : index
    %c0_34 = arith.constant 0 : index
    %43 = vector.load %arg5[%c0_33, %c0_34] : memref<1536x32xf32, #tpu.memory_space<vmem>>, vector<1536x32xf32>
    %cst_35 = arith.constant dense<0.000000e+00> : vector<2x32xf32>
    %44 = tpu.matmul %42, %43, %cst_35 {dimension_numbers = #tpu.dot_dimension_numbers<[1], [0], [0], [1], [0, 0, 1, 1], [], []>} : vector<2x1536xf32>, vector<1536x32xf32>, vector<2x32xf32> -> vector<2x32xf32>
    %c2_36 = arith.constant 2 : index
    %c0_37 = arith.constant 0 : index
    %45 = vector.load %arg7[%c2_36, %c0_37] : memref<8x256xf32, #tpu.memory_space<vmem>>, vector<1x32xf32>
    %46 = vector.broadcast %45 : vector<1x32xf32> to vector<2x32xf32>
    %47 = arith.addf %44, %46 : vector<2x32xf32>
    %cst_38 = arith.constant 0.000000e+00 : f32
    %48 = vector.broadcast %cst_38 : f32 to vector<2x32xf32>
    %49 = arith.cmpf ogt, %47, %48 : vector<2x32xf32>
    %cst_39 = arith.constant 0.000000e+00 : f32
    %50 = vector.broadcast %cst_39 : f32 to vector<2x32xf32>
    %51 = arith.minimumf %47, %50 : vector<2x32xf32>
    %52 = math.exp %51 : vector<2x32xf32>
    %cst_40 = arith.constant 1.000000e+00 : f32
    %53 = vector.broadcast %cst_40 : f32 to vector<2x32xf32>
    %54 = arith.subf %52, %53 : vector<2x32xf32>
    %55 = arith.select %49, %47, %54 : vector<2x32xi1>, vector<2x32xf32>
    %c0_41 = arith.constant 0 : index
    %c0_42 = arith.constant 0 : index
    %56 = vector.load %arg2[%c0_41, %c0_42] : memref<2x32xf32, #tpu.memory_space<vmem>>, vector<2x32xf32>
    %c0_43 = arith.constant 0 : index
    %c0_44 = arith.constant 0 : index
    %57 = vector.load %arg1[%c0_43, %c0_44] : memref<2x5xf32, #tpu.memory_space<vmem>>, vector<2x5xf32>
    %cst_45 = arith.constant 0.000000e+00 : f32
    %58 = vector.broadcast %cst_45 : f32 to vector<2x59xf32>
    %59 = tpu.concatenate %55, %56, %57, %58 in 1 : vector<2x32xf32>, vector<2x32xf32>, vector<2x5xf32>, vector<2x59xf32> -> vector<2x128xf32>
    %c0_46 = arith.constant 0 : index
    %c0_47 = arith.constant 0 : index
    %60 = vector.load %arg6[%c0_46, %c0_47] : memref<160x128xf32, #tpu.memory_space<vmem>>, vector<128x128xf32>
    %cst_48 = arith.constant dense<0.000000e+00> : vector<2x128xf32>
    %61 = tpu.matmul %59, %60, %cst_48 {dimension_numbers = #tpu.dot_dimension_numbers<[1], [0], [0], [1], [0, 0, 1, 1], [], []>} : vector<2x128xf32>, vector<128x128xf32>, vector<2x128xf32> -> vector<2x128xf32>
    %c3 = arith.constant 3 : index
    %c0_49 = arith.constant 0 : index
    %62 = vector.load %arg7[%c3, %c0_49] : memref<8x256xf32, #tpu.memory_space<vmem>>, vector<1x128xf32>
    %63 = vector.broadcast %62 : vector<1x128xf32> to vector<2x128xf32>
    %64 = arith.addf %61, %63 : vector<2x128xf32>
    %65 = vector.extract_strided_slice %64 {offsets = [0, 0], sizes = [2, 32], strides = [1, 1]} : vector<2x128xf32> to vector<2x32xf32>
    %cst_50 = arith.constant 0.000000e+00 : f32
    %66 = vector.broadcast %cst_50 : f32 to vector<2x32xf32>
    %67 = arith.subf %66, %65 : vector<2x32xf32>
    %68 = math.exp %67 : vector<2x32xf32>
    %cst_51 = arith.constant 1.000000e+00 : f32
    %69 = vector.broadcast %cst_51 : f32 to vector<2x32xf32>
    %70 = arith.addf %69, %68 : vector<2x32xf32>
    %cst_52 = arith.constant 1.000000e+00 : f32
    %71 = vector.broadcast %cst_52 : f32 to vector<2x32xf32>
    %72 = arith.divf %71, %70 : vector<2x32xf32>
    %73 = vector.extract_strided_slice %64 {offsets = [0, 32], sizes = [2, 32], strides = [1, 1]} : vector<2x128xf32> to vector<2x32xf32>
    %cst_53 = arith.constant 0.000000e+00 : f32
    %74 = vector.broadcast %cst_53 : f32 to vector<2x32xf32>
    %75 = arith.subf %74, %73 : vector<2x32xf32>
    %76 = math.exp %75 : vector<2x32xf32>
    %cst_54 = arith.constant 1.000000e+00 : f32
    %77 = vector.broadcast %cst_54 : f32 to vector<2x32xf32>
    %78 = arith.addf %77, %76 : vector<2x32xf32>
    %cst_55 = arith.constant 1.000000e+00 : f32
    %79 = vector.broadcast %cst_55 : f32 to vector<2x32xf32>
    %80 = arith.divf %79, %78 : vector<2x32xf32>
    %81 = vector.extract_strided_slice %64 {offsets = [0, 64], sizes = [2, 32], strides = [1, 1]} : vector<2x128xf32> to vector<2x32xf32>
    %82 = math.tanh %81 : vector<2x32xf32>
    %83 = vector.extract_strided_slice %64 {offsets = [0, 96], sizes = [2, 32], strides = [1, 1]} : vector<2x128xf32> to vector<2x32xf32>
    %cst_56 = arith.constant 0.000000e+00 : f32
    %84 = vector.broadcast %cst_56 : f32 to vector<2x32xf32>
    %85 = arith.subf %84, %83 : vector<2x32xf32>
    %86 = math.exp %85 : vector<2x32xf32>
    %cst_57 = arith.constant 1.000000e+00 : f32
    %87 = vector.broadcast %cst_57 : f32 to vector<2x32xf32>
    %88 = arith.addf %87, %86 : vector<2x32xf32>
    %cst_58 = arith.constant 1.000000e+00 : f32
    %89 = vector.broadcast %cst_58 : f32 to vector<2x32xf32>
    %90 = arith.divf %89, %88 : vector<2x32xf32>
    %c0_59 = arith.constant 0 : index
    %c0_60 = arith.constant 0 : index
    %91 = vector.load %arg3[%c0_59, %c0_60] : memref<2x32xf32, #tpu.memory_space<vmem>>, vector<2x32xf32>
    %92 = arith.mulf %80, %91 : vector<2x32xf32>
    %93 = arith.mulf %72, %82 : vector<2x32xf32>
    %94 = arith.addf %92, %93 : vector<2x32xf32>
    %95 = math.tanh %94 : vector<2x32xf32>
    %96 = arith.mulf %90, %95 : vector<2x32xf32>
    %c128 = arith.constant 128 : index
    %c0_61 = arith.constant 0 : index
    %97 = vector.load %arg6[%c128, %c0_61] : memref<160x128xf32, #tpu.memory_space<vmem>>, vector<32x128xf32>
    %cst_62 = arith.constant dense<0.000000e+00> : vector<2x128xf32>
    %98 = tpu.matmul %96, %97, %cst_62 {dimension_numbers = #tpu.dot_dimension_numbers<[1], [0], [0], [1], [0, 0, 1, 1], [], []>} : vector<2x32xf32>, vector<32x128xf32>, vector<2x128xf32> -> vector<2x128xf32>
    %c4_63 = arith.constant 4 : index
    %c0_64 = arith.constant 0 : index
    %99 = vector.load %arg7[%c4_63, %c0_64] : memref<8x256xf32, #tpu.memory_space<vmem>>, vector<1x128xf32>
    %100 = vector.broadcast %99 : vector<1x128xf32> to vector<2x128xf32>
    %101 = arith.addf %98, %100 : vector<2x128xf32>
    %102 = vector.extract_strided_slice %101 {offsets = [0, 0], sizes = [2, 3], strides = [1, 1]} : vector<2x128xf32> to vector<2x3xf32>
    %cst_65 = arith.constant dense<0xFF800000> : vector<2xf32>
    %103 = vector.multi_reduction <maximumf>, %102, %cst_65 [1] : vector<2x3xf32> to vector<2xf32>
    %104 = vector.shape_cast %103 : vector<2xf32> to vector<2x1xf32>
    %105 = vector.broadcast %104 : vector<2x1xf32> to vector<2x3xf32>
    %106 = arith.subf %102, %105 : vector<2x3xf32>
    %107 = math.exp %106 : vector<2x3xf32>
    %cst_66 = arith.constant dense<0.000000e+00> : vector<2xf32>
    %108 = vector.multi_reduction <add>, %107, %cst_66 [1] : vector<2x3xf32> to vector<2xf32>
    %109 = vector.shape_cast %108 : vector<2xf32> to vector<2x1xf32>
    %110 = vector.broadcast %109 : vector<2x1xf32> to vector<2x3xf32>
    %111 = arith.divf %107, %110 : vector<2x3xf32>
    %cst_67 = arith.constant 1.000000e+00 : f32
    %112 = vector.broadcast %cst_67 : f32 to vector<2x3xf32>
    %113 = arith.minimumf %111, %112 : vector<2x3xf32>
    %114 = vector.extract_strided_slice %101 {offsets = [0, 3], sizes = [2, 3], strides = [1, 1]} : vector<2x128xf32> to vector<2x3xf32>
    %115 = arith.mulf %114, %113 : vector<2x3xf32>
    %cst_68 = arith.constant dense<0.000000e+00> : vector<2xf32>
    %116 = vector.multi_reduction <add>, %115, %cst_68 [1] : vector<2x3xf32> to vector<2xf32>
    %117 = vector.shape_cast %116 : vector<2xf32> to vector<2x1xf32>
    %118 = vector.extract_strided_slice %101 {offsets = [0, 6], sizes = [2, 3], strides = [1, 1]} : vector<2x128xf32> to vector<2x3xf32>
    %cst_69 = arith.constant dense<0xFF800000> : vector<2xf32>
    %119 = vector.multi_reduction <maximumf>, %118, %cst_69 [1] : vector<2x3xf32> to vector<2xf32>
    %120 = vector.shape_cast %119 : vector<2xf32> to vector<2x1xf32>
    %121 = vector.broadcast %120 : vector<2x1xf32> to vector<2x3xf32>
    %122 = arith.subf %118, %121 : vector<2x3xf32>
    %123 = math.exp %122 : vector<2x3xf32>
    %cst_70 = arith.constant dense<0.000000e+00> : vector<2xf32>
    %124 = vector.multi_reduction <add>, %123, %cst_70 [1] : vector<2x3xf32> to vector<2xf32>
    %125 = vector.shape_cast %124 : vector<2xf32> to vector<2x1xf32>
    %126 = vector.broadcast %125 : vector<2x1xf32> to vector<2x3xf32>
    %127 = arith.divf %123, %126 : vector<2x3xf32>
    %cst_71 = arith.constant 1.000000e+00 : f32
    %128 = vector.broadcast %cst_71 : f32 to vector<2x3xf32>
    %129 = arith.minimumf %127, %128 : vector<2x3xf32>
    %130 = vector.extract_strided_slice %101 {offsets = [0, 9], sizes = [2, 3], strides = [1, 1]} : vector<2x128xf32> to vector<2x3xf32>
    %131 = arith.mulf %130, %129 : vector<2x3xf32>
    %cst_72 = arith.constant dense<0.000000e+00> : vector<2xf32>
    %132 = vector.multi_reduction <add>, %131, %cst_72 [1] : vector<2x3xf32> to vector<2xf32>
    %133 = vector.shape_cast %132 : vector<2xf32> to vector<2x1xf32>
    %134 = vector.extract_strided_slice %101 {offsets = [0, 12], sizes = [2, 1], strides = [1, 1]} : vector<2x128xf32> to vector<2x1xf32>
    %cst_73 = arith.constant 0.000000e+00 : f32
    %135 = vector.broadcast %cst_73 : f32 to vector<2x1xf32>
    %136 = arith.subf %135, %134 : vector<2x1xf32>
    %137 = math.exp %136 : vector<2x1xf32>
    %cst_74 = arith.constant 1.000000e+00 : f32
    %138 = vector.broadcast %cst_74 : f32 to vector<2x1xf32>
    %139 = arith.addf %138, %137 : vector<2x1xf32>
    %cst_75 = arith.constant 1.000000e+00 : f32
    %140 = vector.broadcast %cst_75 : f32 to vector<2x1xf32>
    %141 = arith.divf %140, %139 : vector<2x1xf32>
    %cst_76 = arith.constant 0.000000e+00 : f32
    %142 = vector.broadcast %cst_76 : f32 to vector<2x1xf32>
    %143 = tpu.concatenate %113, %114, %117, %129, %130, %133, %141, %142 in 1 : vector<2x3xf32>, vector<2x3xf32>, vector<2x1xf32>, vector<2x3xf32>, vector<2x3xf32>, vector<2x1xf32>, vector<2x1xf32>, vector<2x1xf32> -> vector<2x16xf32>
    %cst_77 = arith.constant 0.000000e+00 : f32
    %144 = vector.broadcast %cst_77 : f32 to vector<2x128xf32>
    %c0_78 = arith.constant 0 : index
    %c0_79 = arith.constant 0 : index
    %145 = vector.load %arg8[%c0_78, %c0_79] : memref<2x128xf32, #tpu.memory_space<vmem>>, vector<2x128xf32>
    tpu.vector_store %arg8[%c0_78, %c0_79], %144 {strides = array<i32>} : memref<2x128xf32, #tpu.memory_space<vmem>>, vector<2x128xf32>,
    %c0_80 = arith.constant 0 : index
    %c0_81 = arith.constant 0 : index
    %146 = vector.load %arg8[%c0_80, %c0_81] : memref<2x128xf32, #tpu.memory_space<vmem>>, vector<2x16xf32>
    tpu.vector_store %arg8[%c0_80, %c0_81], %143 {strides = array<i32>} : memref<2x128xf32, #tpu.memory_space<vmem>>, vector<2x16xf32>,
    %c0_82 = arith.constant 0 : index
    %c16 = arith.constant 16 : index
    %147 = vector.load %arg8[%c0_82, %c16] : memref<2x128xf32, #tpu.memory_space<vmem>>, vector<2x32xf32>
    tpu.vector_store %arg8[%c0_82, %c16], %96 {strides = array<i32>} : memref<2x128xf32, #tpu.memory_space<vmem>>, vector<2x32xf32>,
    %c0_83 = arith.constant 0 : index
    %c48 = arith.constant 48 : index
    %148 = vector.load %arg8[%c0_83, %c48] : memref<2x128xf32, #tpu.memory_space<vmem>>, vector<2x32xf32>
    tpu.vector_store %arg8[%c0_83, %c48], %94 {strides = array<i32>} : memref<2x128xf32, #tpu.memory_space<vmem>>, vector<2x32xf32>,
    return
  }
}

</mosaic_0001>

<bundles_post_ra>
// kernel: actor_critic_forward.1
= control target key start
LH: loop header
LB: loop body
LE: loop exit
PB: predicated region body
PF: predicated region fallthrough
CT: control target
= control target key end

     0   :  { %vm254_vm6 = vcmask 1045504   ;;  %vm275_vm7 = vcmask 1043456   ;;  %s2608_s16 = smov 32   ;;  %s2609_s19 = smov 64   ;;  %vm2611_vm12 = vmmov 0   ;;  %vm1453_vm13 = vcmask 261120   ;;  %s4209_s4 = inlined_call_operand.vmem [shape: f32[1024,256], index: 4, kind: input, shape index: {}]   ;;  %s4210_s0 = inlined_call_operand.vmem [shape: f32[20,128], index: 0, kind: input, shape index: {}]   ;;  %s4211_s7 = inlined_call_operand.vmem [shape: f32[8,256], index: 7, kind: input, shape index: {}]   ;;  %s4212_s5 = inlined_call_operand.vmem [shape: f32[1536,32], index: 5, kind: input, shape index: {}]   ;;  %s4213_s2 = inlined_call_operand.vmem [shape: f32[2,32], index: 2, kind: input, shape index: {}]   ;;  %s4214_s1 = inlined_call_operand.vmem [shape: f32[2,5], index: 1, kind: input, shape index: {}]   ;;  %s4215_s6 = inlined_call_operand.vmem [shape: f32[160,128], index: 6, kind: input, shape index: {}]   ;;  %s4216_s3 = inlined_call_operand.vmem [shape: f32[2,32], index: 3, kind: input, shape index: {}]   ;;  %s4217_s8 = inlined_call_operand.vmem [shape: f32[2,128], index: 8, kind: output, shape index: {}]  }
   0x1   :  { %v36_v0 = vld [vmem:[%s4209_s4 + $0x8] sm:$0xff]  ;;  %v38_v1 = vld [vmem:[%s4209_s4 + $0x18] sm:$0xff]  ;;  %v35_v2 = vld [vmem:[%s4209_s4] sm:$0xff]  ;;  %vm1455_vm15 = vcmask 523264   ;;  %s2616_s15 = smov 2   ;;  %s2617_s17 = smov 119  }
   0x2   :  { %v2052_v3 = vpack.c.bf16 %v38_v1, %v36_v0  ;;  %v37_v4 = vld [vmem:[%s4209_s4 + $0x10] sm:$0xff]  ;;  %v40_v5 = vld [vmem:[%s4209_s4 + $0x28] sm:$0xff]  ;;  %v42_v6 = vld [vmem:[%s4209_s4 + $0x38] sm:$0xff]  ;;  %s2618_s18 = smov 16  }
   0x3   :  { %v2054_v7 = vpack.c.bf16 %v37_v4, %v35_v2  ;;  %v2056_v8 = vpack.c.bf16 %v42_v6, %v40_v5  ;;  %v39_v9 = vld [vmem:[%s4209_s4 + $0x20] sm:$0xff]  ;;  %v41_v10 = vld [vmem:[%s4209_s4 + $0x30] sm:$0xff]  ;;  %v44_v11 = vld [vmem:[%s4209_s4 + $0x48] sm:$0xff] }
   0x4   :  { %2053 = vmatprep.subr.bf16.mxu0 %v2052_v3  ;;  %v46_v12 = vld [vmem:[%s4209_s4 + $0x58] sm:$0xff]  ;;  %v2058_v13 = vpack.c.bf16 %v41_v10, %v39_v9  ;;  %v43_v15 = vld [vmem:[%s4209_s4 + $0x40] sm:$0xff]  ;;  %v45_v16 = vld [vmem:[%s4209_s4 + $0x50] sm:$0xff] }
   0x5   :  { %2055 = vmatpush1.bf16.msra.mxu0 %v2054_v7  ;;  %v2060_v14 = vpack.c.bf16 %v46_v12, %v44_v11  ;;  %v48_v17 = vld [vmem:[%s4209_s4 + $0x68] sm:$0xff]  ;;  %v50_v18 = vld [vmem:[%s4209_s4 + $0x78] sm:$0xff]  ;;  %v2062_v19 = vpack.c.bf16 %v45_v16, %v43_v15  ;;  %v47_v21 = vld [vmem:[%s4209_s4 + $0x60] sm:$0xff] }
   0x6   :  { %2057 = vmatprep.subr.bf16.mxu0 %v2056_v8  ;;  %v2064_v20 = vpack.c.bf16 %v50_v18, %v48_v17  ;;  %v49_v22 = vld [vmem:[%s4209_s4 + $0x70] sm:$0xff]  ;;  %v52_v23 = vld [vmem:[%s4209_s4 + $0x88] sm:$0xff]  ;;  %v54_v24 = vld [vmem:[%s4209_s4 + $0x98] sm:$0xff] }
   0x7   :  { %v2066_v25 = vpack.c.bf16 %v49_v22, %v47_v21  ;;  %v2068_v26 = vpack.c.bf16 %v54_v24, %v52_v23  ;;  %v51_v27 = vld [vmem:[%s4209_s4 + $0x80] sm:$0xff]  ;;  %v53_v28 = vld [vmem:[%s4209_s4 + $0x90] sm:$0xff]  ;;  %v56_v29 = vld [vmem:[%s4209_s4 + $0xa8] sm:$0xff] }
   0x8   :  { %v58_v30 = vld [vmem:[%s4209_s4 + $0xb8] sm:$0xff]  ;;  %v2070_v31 = vpack.c.bf16 %v53_v28, %v51_v27  ;;  %v55_v33 = vld [vmem:[%s4209_s4 + $0xa0] sm:$0xff]  ;;  %v57_v34 = vld [vmem:[%s4209_s4 + $0xb0] sm:$0xff] }
   0x9   :  { %2059 = vmatpush1.bf16.msra.mxu0 %v2058_v13  ;;  %v2072_v32 = vpack.c.bf16 %v58_v30, %v56_v29  ;;  %v60_v35 = vld [vmem:[%s4209_s4 + $0xc8] sm:$0xff]  ;;  %v62_v36 = vld [vmem:[%s4209_s4 + $0xd8] sm:$0xff]  ;;  %v2074_v37 = vpack.c.bf16 %v57_v34, %v55_v33  ;;  %v59_v39 = vld [vmem:[%s4209_s4 + $0xc0] sm:$0xff] }
   0xa   :  { %2061 = vmatprep.subr.bf16.mxu0 %v2060_v14  ;;  %v2076_v38 = vpack.c.bf16 %v62_v36, %v60_v35  ;;  %v61_v40 = vld [vmem:[%s4209_s4 + $0xd0] sm:$0xff]  ;;  %v32_v41 = vld [vmem:[%s4210_s0 + $0x2] sm:$0xff]  ;;  %v66_v43 = vld [vmem:[%s4209_s4 + $0xf8] sm:$0xff] }
   0xb   :  { %v64_v42 = vld [vmem:[%s4209_s4 + $0xe8] sm:$0xff]  ;;  %175 = vmatprep.mubr.f32.mxu0 %v32_v41  ;;  %v63_v44 = vld [vmem:[%s4209_s4 + $0xe0] sm:$0xff]  ;;  %v65_v45 = vld [vmem:[%s4209_s4 + $0xf0] sm:$0xff]  ;;  %v2078_v48 = vpack.c.bf16 %v61_v40, %v59_v39 }
   0xc   :  { %v293_v46 = vld [vmem:[%s4209_s4 + $0x208] sm:$0xff]  ;;  %v295_v47 = vld [vmem:[%s4209_s4 + $0x218] sm:$0xff]  ;;  %v292_v51 = vld [vmem:[%s4209_s4 + $0x200] sm:$0xff]  ;;  %v2080_v54 = vpack.c.bf16 %v66_v43, %v64_v42  ;;  %v2082_v0 = vpack.c.bf16 %v65_v45, %v63_v44 }
   0xd   :  { %2063 = vmatpush1.bf16.msra.mxu0 %v2062_v19  ;;  %v68_v49 = vld [vmem:[%s4209_s4 + $0x108] sm:$0xff]  ;;  %v2116_v50 = vpack.c.bf16 %v295_v47, %v293_v46  ;;  %v294_v52 = vld [vmem:[%s4209_s4 + $0x210] sm:$0xff]  ;;  %v299_v56 = vld [vmem:[%s4209_s4 + $0x238] sm:$0xff] }
   0xe   :  { %2065 = vmatprep.subr.bf16.mxu0 %v2064_v20  ;;  %v297_v53 = vld [vmem:[%s4209_s4 + $0x228] sm:$0xff]  ;;  %v2118_v55 = vpack.c.bf16 %v294_v52, %v292_v51  ;;  %v296_v57 = vld [vmem:[%s4209_s4 + $0x220] sm:$0xff]  ;;  %v298_v58 = vld [vmem:[%s4209_s4 + $0x230] sm:$0xff] }
   0xf   :  { %v70_v59 = vld [vmem:[%s4209_s4 + $0x118] sm:$0xff]  ;;  %2117 = vmatprep.subr.bf16.mxu1 %v2116_v50  ;;  %v2120_v60 = vpack.c.bf16 %v299_v56, %v297_v53  ;;  %v301_v61 = vld [vmem:[%s4209_s4 + $0x248] sm:$0xff]  ;;  %v2122_v63 = vpack.c.bf16 %v298_v58, %v296_v57  ;;  %v67_v1 = vld [vmem:[%s4209_s4 + $0x100] sm:$0xff] }
  0x10   :  { %v303_v62 = vld [vmem:[%s4209_s4 + $0x258] sm:$0xff]  ;;  %2119 = vmatpush1.bf16.msra.mxu1 %v2118_v55  ;;  %v300_v3 = vld [vmem:[%s4209_s4 + $0x240] sm:$0xff]  ;;  %v302_v4 = vld [vmem:[%s4209_s4 + $0x250] sm:$0xff]  ;;  %v2084_v5 = vpack.c.bf16 %v70_v59, %v68_v49 }
  0x11   :  { %2067 = vmatpush1.bf16.msra.mxu0 %v2066_v25  ;;  %2121 = vmatprep.subr.bf16.mxu1 %v2120_v60  ;;  %v2124_v2 = vpack.c.bf16 %v303_v62, %v301_v61  ;;  %v69_v6 = vld [vmem:[%s4209_s4 + $0x110] sm:$0xff]  ;;  %v305_v7 = vld [vmem:[%s4209_s4 + $0x268] sm:$0xff]  ;;  %v307_v8 = vld [vmem:[%s4209_s4 + $0x278] sm:$0xff]  ;;  %v2126_v11 = vpack.c.bf16 %v302_v4, %v300_v3 }
  0x12   :  { %2069 = vmatprep.subr.bf16.mxu0 %v2068_v26  ;;  %v72_v9 = vld [vmem:[%s4209_s4 + $0x128] sm:$0xff]  ;;  %v74_v10 = vld [vmem:[%s4209_s4 + $0x138] sm:$0xff]  ;;  %v2086_v12 = vpack.c.bf16 %v69_v6, %v67_v1  ;;  %v71_v13 = vld [vmem:[%s4209_s4 + $0x120] sm:$0xff]  ;;  %v2128_v14 = vpack.c.bf16 %v307_v8, %v305_v7 }
  0x13   :  { %v304_v15 = vld [vmem:[%s4209_s4 + $0x260] sm:$0xff]  ;;  %v306_v16 = vld [vmem:[%s4209_s4 + $0x270] sm:$0xff]  ;;  %v2088_v17 = vpack.c.bf16 %v74_v10, %v72_v9  ;;  %v309_v19 = vld [vmem:[%s4209_s4 + $0x288] sm:$0xff] }
  0x14   :  { %2123 = vmatpush1.bf16.msra.mxu1 %v2122_v63  ;;  %v73_v18 = vld [vmem:[%s4209_s4 + $0x130] sm:$0xff]  ;;  %v311_v20 = vld [vmem:[%s4209_s4 + $0x298] sm:$0xff]  ;;  %v76_v21 = vld [vmem:[%s4209_s4 + $0x148] sm:$0xff]  ;;  %v2130_v23 = vpack.c.bf16 %v306_v16, %v304_v15 }
  0x15   :  { %2071 = vmatpush1.bf16.msra.mxu0 %v2070_v31  ;;  %2125 = vmatprep.subr.bf16.mxu1 %v2124_v2  ;;  %v78_v22 = vld [vmem:[%s4209_s4 + $0x158] sm:$0xff]  ;;  %v2090_v24 = vpack.c.bf16 %v73_v18, %v71_v13  ;;  %v75_v25 = vld [vmem:[%s4209_s4 + $0x140] sm:$0xff]  ;;  %v2132_v26 = vpack.c.bf16 %v311_v20, %v309_v19  ;;  %v310_v28 = vld [vmem:[%s4209_s4 + $0x290] sm:$0xff] }
  0x16   :  { %2073 = vmatprep.subr.bf16.mxu0 %v2072_v32  ;;  %v308_v27 = vld [vmem:[%s4209_s4 + $0x280] sm:$0xff]  ;;  %v2092_v29 = vpack.c.bf16 %v78_v22, %v76_v21  ;;  %v77_v30 = vld [vmem:[%s4209_s4 + $0x150] sm:$0xff]  ;;  %v313_v31 = vld [vmem:[%s4209_s4 + $0x2a8] sm:$0xff] }
  0x17   :  { %v315_v32 = vld [vmem:[%s4209_s4 + $0x2b8] sm:$0xff]  ;;  %v80_v33 = vld [vmem:[%s4209_s4 + $0x168] sm:$0xff]  ;;  %v2134_v35 = vpack.c.bf16 %v310_v28, %v308_v27  ;;  %v2094_v36 = vpack.c.bf16 %v77_v30, %v75_v25  ;;  %v312_v39 = vld [vmem:[%s4209_s4 + $0x2a0] sm:$0xff] }
  0x18   :  { %2127 = vmatpush1.bf16.msra.mxu1 %v2126_v11  ;;  %v82_v34 = vld [vmem:[%s4209_s4 + $0x178] sm:$0xff]  ;;  %v314_v40 = vld [vmem:[%s4209_s4 + $0x2b0] sm:$0xff]  ;;  %v317_v43 = vld [vmem:[%s4209_s4 + $0x2c8] sm:$0xff] }
  0x19   :  { %2075 = vmatpush1.bf16.msra.mxu0 %v2074_v37  ;;  %2129 = vmatprep.subr.bf16.mxu1 %v2128_v14  ;;  %v79_v37 = vld [vmem:[%s4209_s4 + $0x160] sm:$0xff]  ;;  %v2096_v41 = vpack.c.bf16 %v82_v34, %v80_v33  ;;  %v81_v42 = vld [vmem:[%s4209_s4 + $0x170] sm:$0xff]  ;;  %v319_v44 = vld [vmem:[%s4209_s4 + $0x2d8] sm:$0xff]  ;;  %v2138_v47 = vpack.c.bf16 %v314_v40, %v312_v39 }
  0x1a   :  { %2077 = vmatprep.subr.bf16.mxu0 %v2076_v38  ;;  %v2136_v38 = vpack.c.bf16 %v315_v32, %v313_v31  ;;  %v84_v45 = vld [vmem:[%s4209_s4 + $0x188] sm:$0xff]  ;;  %v86_v46 = vld [vmem:[%s4209_s4 + $0x198] sm:$0xff]  ;;  %v83_v49 = vld [vmem:[%s4209_s4 + $0x180] sm:$0xff]  ;;  %v2140_v50 = vpack.c.bf16 %v319_v44, %v317_v43 }
  0x1b   :  { %v316_v51 = vld [vmem:[%s4209_s4 + $0x2c0] sm:$0xff]  ;;  %v318_v52 = vld [vmem:[%s4209_s4 + $0x2d0] sm:$0xff]  ;;  %v2100_v53 = vpack.c.bf16 %v86_v46, %v84_v45  ;;  %v321_v55 = vld [vmem:[%s4209_s4 + $0x2e8] sm:$0xff] }
  0x1c   :  { %2131 = vmatpush1.bf16.msra.mxu1 %v2130_v23  ;;  %v323_v56 = vld [vmem:[%s4209_s4 + $0x2f8] sm:$0xff]  ;;  %v88_v57 = vld [vmem:[%s4209_s4 + $0x1a8] sm:$0xff]  ;;  %v2142_v59 = vpack.c.bf16 %v318_v52, %v316_v51  ;;  %v87_v61 = vld [vmem:[%s4209_s4 + $0x1a0] sm:$0xff] }
  0x1d   :  { %2079 = vmatpush1.bf16.msra.mxu0 %v2078_v48  ;;  %2133 = vmatprep.subr.bf16.mxu1 %v2132_v26  ;;  %v2098_v48 = vpack.c.bf16 %v81_v42, %v79_v37  ;;  %v90_v58 = vld [vmem:[%s4209_s4 + $0x1b8] sm:$0xff]  ;;  %v2144_v62 = vpack.c.bf16 %v323_v56, %v321_v55  ;;  %v320_v63 = vld [vmem:[%s4209_s4 + $0x2e0] sm:$0xff]  ;;  %v89_v2 = vld [vmem:[%s4209_s4 + $0x1b0] sm:$0xff] }
  0x1e   :  { %2081 = vmatprep.subr.bf16.mxu0 %v2080_v54  ;;  %v85_v54 = vld [vmem:[%s4209_s4 + $0x190] sm:$0xff]  ;;  %v2104_v1 = vpack.c.bf16 %v90_v58, %v88_v57  ;;  %v325_v3 = vld [vmem:[%s4209_s4 + $0x308] sm:$0xff]  ;;  %v327_v4 = vld [vmem:[%s4209_s4 + $0x318] sm:$0xff]  ;;  %v2106_v8 = vpack.c.bf16 %v89_v2, %v87_v61 }
  0x1f   :  { %v2102_v60 = vpack.c.bf16 %v85_v54, %v83_v49  ;;  %v94_v6 = vld [vmem:[%s4209_s4 + $0x1d8] sm:$0xff]  ;;  %v91_v9 = vld [vmem:[%s4209_s4 + $0x1c0] sm:$0xff]  ;;  %v2148_v10 = vpack.c.bf16 %v327_v4, %v325_v3  ;;  %v93_v14 = vld [vmem:[%s4209_s4 + $0x1d0] sm:$0xff] }
  0x20   :  { %2135 = vmatpush1.bf16.msra.mxu1 %v2134_v35  ;;  %v324_v11 = vld [vmem:[%s4209_s4 + $0x300] sm:$0xff]  ;;  %v329_v15 = vld [vmem:[%s4209_s4 + $0x328] sm:$0xff]  ;;  %v331_v16 = vld [vmem:[%s4209_s4 + $0x338] sm:$0xff]  ;;  %v2110_v20 = vpack.c.bf16 %v93_v14, %v91_v9  ;;  %v2607_v9 = vmov 0.0  }
  0x21   :  { %2083 = vmatpush1.bf16.msra.mxu0 %v2082_v0  ;;  %2137 = vmatprep.subr.bf16.mxu1 %v2136_v38  ;;  %v322_v0 = vld [vmem:[%s4209_s4 + $0x2f0] sm:$0xff]  ;;  %v98_v18 = vld [vmem:[%s4209_s4 + $0x1f8] sm:$0xff]  ;;  %v95_v21 = vld [vmem:[%s4209_s4 + $0x1e0] sm:$0xff]  ;;  %v2152_v22 = vpack.c.bf16 %v331_v16, %v329_v15  ;;  %231 = vst [vmem:[#allocation2 + $0x28] sm:$0x3c] %v2607_v9 }
  0x22   :  { %2085 = vmatprep.subr.bf16.mxu0 %v2084_v5  ;;  %v92_v5 = vld [vmem:[%s4209_s4 + $0x1c8] sm:$0xff]  ;;  %v2146_v7 = vpack.c.bf16 %v322_v0, %v320_v63  ;;  %v328_v23 = vld [vmem:[%s4209_s4 + $0x320] sm:$0xff]  ;;  %v97_v26 = vld [vmem:[%s4209_s4 + $0x1f0] sm:$0xff]  ;;  %230 = vst [vmem:[#allocation2 + $0x20] sm:$0x3c] %v2607_v9 }
  0x23   :  { %v2108_v13 = vpack.c.bf16 %v94_v6, %v92_v5  ;;  %v333_v27 = vld [vmem:[%s4209_s4 + $0x348] sm:$0xff]  ;;  %v335_v28 = vld [vmem:[%s4209_s4 + $0x358] sm:$0xff]  ;;  %v2114_v30 = vpack.c.bf16 %v97_v26, %v95_v21  ;;  %v332_v32 = vld [vmem:[%s4209_s4 + $0x340] sm:$0xff]  ;;  %1740 = vst [vmem:[%s4217_s8] sm:$0x3] %v2607_v9 }
  0x24   :  { %2139 = vmatpush1.bf16.msra.mxu1 %v2138_v47  ;;  %v2156_v31 = vpack.c.bf16 %v335_v28, %v333_v27  ;;  %v334_v33 = vld [vmem:[%s4209_s4 + $0x350] sm:$0xff]  ;;  %v29_v35 = vld [vmem:[%s4210_s0] sm:$0xff]  ;;  %v30_v37 = vld [vmem:[%s4210_s0 + $0x8] sm:$0xff] }
  0x25   :  { %2087 = vmatpush1.bf16.msra.mxu0 %v2086_v12  ;;  %2141 = vmatprep.subr.bf16.mxu1 %v2140_v50  ;;  %v326_v12 = vld [vmem:[%s4209_s4 + $0x310] sm:$0xff]  ;;  %v2158_v34 = vpack.c.bf16 %v334_v33, %v332_v32  ;;  %v337_v40 = vld [vmem:[%s4209_s4 + $0x368] sm:$0xff]  ;;  %v336_v43 = vld [vmem:[%s4209_s4 + $0x360] sm:$0xff] }
  0x26   :  { %2089 = vmatprep.subr.bf16.mxu0 %v2088_v17  ;;  %v96_v17 = vld [vmem:[%s4209_s4 + $0x1e8] sm:$0xff]  ;;  %v2150_v19 = vpack.c.bf16 %v326_v12, %v324_v11  ;;  %v34_v38 = vld [vmem:[%s4210_s0 + $0x12] sm:$0x3]  ;;  %v31_v39 = vld [vmem:[%s4210_s0 + $0x10] sm:$0x3] }
  0x27   :  { %v2112_v25 = vpack.c.bf16 %v98_v18, %v96_v17  ;;  %v338_v44 = vld [vmem:[%s4209_s4 + $0x370] sm:$0xff]  ;;  %v341_v46 = vld [vmem:[%s4209_s4 + $0x388] sm:$0xff]  ;;  %v343_v47 = vld [vmem:[%s4209_s4 + $0x398] sm:$0xff] }
  0x28   :  { %2143 = vmatpush1.bf16.msra.mxu1 %v2142_v59  ;;  %v2162_v45 = vpack.c.bf16 %v338_v44, %v336_v43  ;;  %v340_v49 = vld [vmem:[%s4209_s4 + $0x380] sm:$0xff]  ;;  %v342_v50 = vld [vmem:[%s4209_s4 + $0x390] sm:$0xff]  ;;  %v345_v52 = vld [vmem:[%s4209_s4 + $0x3a8] sm:$0xff] }
  0x29   :  { %2091 = vmatpush1.bf16.msra.mxu0 %v2090_v24  ;;  %2145 = vmatprep.subr.bf16.mxu1 %v2144_v62  ;;  %v330_v24 = vld [vmem:[%s4209_s4 + $0x330] sm:$0xff]  ;;  %v2166_v51 = vpack.c.bf16 %v342_v50, %v340_v49  ;;  %v344_v55 = vld [vmem:[%s4209_s4 + $0x3a0] sm:$0xff]  ;;  %v349_v58 = vld [vmem:[%s4209_s4 + $0x3c8] sm:$0xff] }
  0x2a   :  { %2093 = vmatprep.subr.bf16.mxu0 %v2092_v29  ;;  %v2154_v29 = vpack.c.bf16 %v330_v24, %v328_v23  ;;  %v346_v56 = vld [vmem:[%s4209_s4 + $0x3b0] sm:$0xff]  ;;  %v351_v59 = vld [vmem:[%s4209_s4 + $0x3d8] sm:$0xff]  ;;  %v348_v61 = vld [vmem:[%s4209_s4 + $0x3c0] sm:$0xff] }
  0x2b   :  { %v2170_v57 = vpack.c.bf16 %v346_v56, %v344_v55  ;;  %v350_v62 = vld [vmem:[%s4209_s4 + $0x3d0] sm:$0xff]  ;;  %v353_v0 = vld [vmem:[%s4209_s4 + $0x3e8] sm:$0xff]  ;;  %v352_v3 = vld [vmem:[%s4209_s4 + $0x3e0] sm:$0xff] }
  0x2c   :  { %2147 = vmatpush1.bf16.msra.mxu1 %v2146_v7  ;;  %v2174_v63 = vpack.c.bf16 %v350_v62, %v348_v61  ;;  %v354_v4 = vld [vmem:[%s4209_s4 + $0x3f0] sm:$0xff]  ;;  %v357_v6 = vld [vmem:[%s4209_s4 + $0x408] sm:$0xff]  ;;  %v359_v7 = vld [vmem:[%s4209_s4 + $0x418] sm:$0xff] }
  0x2d   :  { %2095 = vmatpush1.bf16.msra.mxu0 %v2094_v36  ;;  %2149 = vmatprep.subr.bf16.mxu1 %v2148_v10  ;;  %v33_v36 = vld [vmem:[%s4210_s0 + $0xa] sm:$0xff]  ;;  %v2178_v5 = vpack.c.bf16 %v354_v4, %v352_v3  ;;  %v101_v10 = vlaneseq }
  0x2e   :  { %2097 = vmatprep.subr.bf16.mxu0 %v2096_v41  ;;  %v339_v41 = vld [vmem:[%s4209_s4 + $0x378] sm:$0xff]  ;;  %v358_v43 = vld [vmem:[%s4209_s4 + $0x410] sm:$0xff] }
  0x2f   :  { %v2160_v42 = vpack.c.bf16 %v339_v41, %v337_v40  ;;  %v3075_v11 = vshrl.u32 %v101_v10, 7  ;;  %v362_v55 = vld [vmem:[%s4209_s4 + $0x430] sm:$0xff] }
  0x30   :  { %2151 = vmatpush1.bf16.msra.mxu1 %v2150_v19  ;;  %v366_v3 = vld [vmem:[%s4209_s4 + $0x450] sm:$0xff] }
  0x31   :  { %2099 = vmatpush1.bf16.msra.mxu0 %v2098_v48  ;;  %2153 = vmatprep.subr.bf16.mxu1 %v2152_v22  ;;  %v2164_v48 = vpack.c.bf16 %v343_v47, %v341_v46  ;;  %v103_v12 = vsub.s32 0, %v3075_v11  ;;  %v107_v14 = vsub.s32 1, %v3075_v11  ;;  %v361_v46 = vld [vmem:[%s4209_s4 + $0x428] sm:$0xff]  ;;  %v363_v47 = vld [vmem:[%s4209_s4 + $0x438] sm:$0xff] }
  0x32   :  { %2101 = vmatprep.subr.bf16.mxu0 %v2100_v53  ;;  %v347_v53 = vld [vmem:[%s4209_s4 + $0x3b8] sm:$0xff] }
  0x33   :  { %v2168_v54 = vpack.c.bf16 %v347_v53, %v345_v52  ;;  %v2184_v53 = vpack.c.bf16 %v363_v47, %v361_v46  ;;  %v382_v46 = vld [vmem:[%s4209_s4 + $0x4d0] sm:$0xff]  ;;  %v385_v47 = vld [vmem:[%s4209_s4 + $0x4e8] sm:$0xff] }
  0x34   :  { %2155 = vmatpush1.bf16.msra.mxu1 %v2154_v29 }
  0x35   :  { %2103 = vmatpush1.bf16.msra.mxu0 %v2102_v60  ;;  %2157 = vmatprep.subr.bf16.mxu1 %v2156_v31  ;;  %v2172_v60 = vpack.c.bf16 %v351_v59, %v349_v58  ;;  %v367_v58 = vld [vmem:[%s4209_s4 + $0x458] sm:$0xff] }
  0x36   :  { %2105 = vmatprep.subr.bf16.mxu0 %v2104_v1  ;;  %v355_v1 = vld [vmem:[%s4209_s4 + $0x3f8] sm:$0xff] }
  0x37   :  { %v2176_v2 = vpack.c.bf16 %v355_v1, %v353_v0 }
  0x38   :  { %2159 = vmatpush1.bf16.msra.mxu1 %v2158_v34 }
  0x39   :  { %2107 = vmatpush1.bf16.msra.mxu0 %v2106_v8  ;;  %2161 = vmatprep.subr.bf16.mxu1 %v2160_v42  ;;  %v2180_v8 = vpack.c.bf16 %v359_v7, %v357_v6  ;;  %v356_v42 = vld [vmem:[%s4209_s4 + $0x400] sm:$0xff]  ;;  %v371_v6 = vld [vmem:[%s4209_s4 + $0x478] sm:$0xff] }
  0x3a   :  { %2109 = vmatprep.subr.bf16.mxu0 %v2108_v13  ;;  %v99_v13 = vld [vmem:[%s4211_s7] ss:$8 sm:$0x3]  ;;  %v2182_v50 = vpack.c.bf16 %v358_v43, %v356_v42  ;;  %v383_v42 = vld [vmem:[%s4209_s4 + $0x4d8] sm:$0xff] }
  0x3b   :  { %v104_v15 = vrot.slane %v99_v13, %v103_v12  ;;  %v108_v16 = vrot.slane %v99_v13, %v107_v14 }
  0x3c   :  { %2163 = vmatpush1.bf16.msra.mxu1 %v2162_v45 }
  0x3d   :  { %2111 = vmatpush1.bf16.msra.mxu0 %v2110_v20  ;;  %2165 = vmatprep.subr.bf16.mxu1 %v2164_v48 }
  0x3e   :  { %2113 = vmatprep.subr.bf16.mxu0 %v2112_v25 }
  0x40   :  { %2167 = vmatpush1.bf16.msra.mxu1 %v2166_v51 }
  0x41   :  { %2115 = vmatpush1.bf16.msra.mxu0 %v2114_v30  ;;  %2169 = vmatprep.subr.bf16.mxu1 %v2168_v54  ;;  %v360_v54 = vld [vmem:[%s4209_s4 + $0x420] sm:$0xff] }
  0x42   :  { %v2186_v61 = vpack.c.bf16 %v362_v55, %v360_v54  ;;  %v391_v54 = vld [vmem:[%s4209_s4 + $0x518] sm:$0xff] }
  0x44   :  { %176 = vmatmul.mubr.f32.vlgmr.msra.gmra.mrb[0].mxu0 %v29_v35  ;;  %2171 = vmatpush1.bf16.msra.mxu1 %v2170_v57  ;;  %v365_v57 = vld [vmem:[%s4209_s4 + $0x448] sm:$0xff] }
  0x45   :  { %181 = vmatprep.mubr.f32.mxu0 %v33_v36  ;;  %2173 = vmatprep.subr.bf16.mxu1 %v2172_v60  ;;  %v2188_v0 = vpack.c.bf16 %v367_v58, %v365_v57  ;;  %v388_v57 = vld [vmem:[%s4209_s4 + $0x500] sm:$0xff]  ;;  %v390_v58 = vld [vmem:[%s4209_s4 + $0x510] sm:$0xff] }
  0x48   :  { %182 = vmatmul.mubr.f32.gmra.mrb[2].mxu0 %v30_v37  ;;  %2175 = vmatpush1.bf16.msra.mxu1 %v2174_v63 }
  0x49   :  { %187 = vmatprep.mubr.f32.mxu0 %v34_v38  ;;  %2177 = vmatprep.subr.bf16.mxu1 %v2176_v2  ;;  %v364_v2 = vld [vmem:[%s4209_s4 + $0x440] sm:$0xff] }
  0x4a   :  { %v2190_v10 = vpack.c.bf16 %v366_v3, %v364_v2  ;;  %v394_v2 = vld [vmem:[%s4209_s4 + $0x530] sm:$0xff]  ;;  %v397_v3 = vld [vmem:[%s4209_s4 + $0x548] sm:$0xff] }
  0x4c   :  { %188 = vmatmul.mubr.f32.gmra.mrb[4].mxu0 %v31_v39  ;;  %2179 = vmatpush1.bf16.msra.mxu1 %v2178_v5  ;;  %v369_v5 = vld [vmem:[%s4209_s4 + $0x468] sm:$0xff] }
  0x4d   :  { %2181 = vmatprep.subr.bf16.mxu1 %v2180_v8 }
 0x117   :  { %v177_v17 = vpop.f32.mrb[0].mxu0 }
 0x118   :  { %v178_v18 = vadd.f32 %v177_v17, %v104_v15  ;;  %v179_v19 = vpop.f32.mrb[1].mxu0 }
 0x119   :  { %v180_v20 = vadd.f32 %v179_v19, %v108_v16  ;;  %v370_v19 = vld [vmem:[%s4209_s4 + $0x470] sm:$0xff] }
 0x11a   :  { %v200_v21 = vmin.f32 %v178_v18, 0.0  ;;  %vm194_vm0 = vcmp.gt.f32.partialorder %v178_v18, 0.0 }
 0x11b   :  { %v201_v22 = vmin.f32 %v180_v20, 0.0  ;;  %v183_v23 = vpop.f32.mrb[2].mxu0  ;;  %vm195_vm1 = vcmp.gt.f32.partialorder %v180_v20, 0.0 }
 0x11c   :  { %v206_v24 = vmul.f32 1.442695, %v200_v21  ;;  %v184_v25 = vadd.f32 %v183_v23, %v104_v15  ;;  %v185_v26 = vpop.f32.mrb[3].mxu0  ;;  %v375_v23 = vld [vmem:[%s4209_s4 + $0x498] sm:$0xff] }
 0x11d   :  { %v208_v27 = vmul.f32 1.442695, %v201_v22  ;;  %v186_v28 = vadd.f32 %v185_v26, %v108_v16  ;;  %v373_v22 = vld [vmem:[%s4209_s4 + $0x488] sm:$0xff]  ;;  %v840_v26 = vld [vmem:[%s4212_s5 + $0x80] sm:$0xff] }
 0x11e   :  { %2561 = vpow2.f32 %v206_v24  ;;  %v202_v29 = vmin.f32 %v184_v25, 0.0  ;;  %vm196_vm2 = vcmp.gt.f32.partialorder %v184_v25, 0.0 }
 0x11f   :  { %2563 = vpow2.f32 %v208_v27  ;;  %v203_v30 = vmin.f32 %v186_v28, 0.0  ;;  %v189_v31 = vpop.f32.mrb[4].mxu0  ;;  %vm197_vm3 = vcmp.gt.f32.partialorder %v186_v28, 0.0  ;;  %v841_v27 = vld [vmem:[%s4212_s5 + $0x88] sm:$0xff] }
 0x120   :  { %v210_v32 = vmul.f32 1.442695, %v202_v29  ;;  %v190_v33 = vadd.f32 %v189_v31, %v104_v15  ;;  %v191_v34 = vpop.f32.mrb[5].mxu0  ;;  %v2196_v29 = vpack.c.bf16 %v375_v23, %v373_v22  ;;  %v374_v31 = vld [vmem:[%s4209_s4 + $0x490] sm:$0xff] }
 0x121   :  { %v212_v35 = vmul.f32 1.442695, %v203_v30  ;;  %v192_v36 = vadd.f32 %v191_v34, %v108_v16  ;;  %v2192_v16 = vpack.c.bf16 %v371_v6, %v369_v5  ;;  %v372_v30 = vld [vmem:[%s4209_s4 + $0x480] sm:$0xff]  ;;  %v377_v34 = vld [vmem:[%s4209_s4 + $0x4a8] sm:$0xff] }
 0x122   :  { %2565 = vpow2.f32 %v210_v32  ;;  %v204_v37 = vmin.f32 %v190_v33, 0.0  ;;  %vm198_vm4 = vcmp.gt.f32.partialorder %v190_v33, 0.0  ;;  %v2308_v32 = vpack.c.bf16 %v841_v27, %v840_v26  ;;  %v409_v26 = vld [vmem:[%s4209_s4 + $0x5a8] sm:$0xff]  ;;  %v411_v27 = vld [vmem:[%s4209_s4 + $0x5b8] sm:$0xff] }
 0x123   :  { %2567 = vpow2.f32 %v212_v35  ;;  %v205_v38 = vmin.f32 %v192_v36, 0.0  ;;  %vm199_vm5 = vcmp.gt.f32.partialorder %v192_v36, 0.0  ;;  %v379_v35 = vld [vmem:[%s4209_s4 + $0x4b8] sm:$0xff] }
 0x124   :  { %v214_v39 = vmul.f32 1.442695, %v204_v37  ;;  %2309 = vmatprep.subr.bf16.mxu0 %v2308_v32  ;;  %v2198_v37 = vpack.c.bf16 %v374_v31, %v372_v30  ;;  %v408_v30 = vld [vmem:[%s4209_s4 + $0x5a0] sm:$0xff]  ;;  %v410_v31 = vld [vmem:[%s4209_s4 + $0x5b0] sm:$0xff]  ;;  %v413_v32 = vld [vmem:[%s4209_s4 + $0x5c8] sm:$0xff] }
 0x125   :  { %v216_v40 = vmul.f32 1.442695, %v205_v38  ;;  %v2200_v38 = vpack.c.bf16 %v379_v35, %v377_v34  ;;  %v2234_v34 = vpack.c.bf16 %v410_v31, %v408_v30  ;;  %v441_v30 = vld [vmem:[%s4209_s4 + $0x6a8] sm:$0xff]  ;;  %v443_v31 = vld [vmem:[%s4209_s4 + $0x6b8] sm:$0xff] }
 0x126   :  { %2569 = vpow2.f32 %v214_v39  ;;  %v376_v39 = vld [vmem:[%s4209_s4 + $0x4a0] sm:$0xff] }
 0x127   :  { %2571 = vpow2.f32 %v216_v40  ;;  %v378_v40 = vld [vmem:[%s4209_s4 + $0x4b0] sm:$0xff] }
 0x128   :  { %v2562_v41 = vpop.eup %2561  ;;  %v2202_v43 = vpack.c.bf16 %v378_v40, %v376_v39  ;;  %v419_v39 = vld [vmem:[%s4209_s4 + $0x5f8] sm:$0xff] }
 0x129   :  { %v2564_v44 = vpop.eup %2563  ;;  %v1758_v45 = vadd.f32 -1.0, %v2562_v41  ;;  %v381_v41 = vld [vmem:[%s4209_s4 + $0x4c8] sm:$0xff] }
 0x12a   :  { %v1759_v48 = vadd.f32 -1.0, %v2564_v44  ;;  %v2204_v44 = vpack.c.bf16 %v383_v42, %v381_v41  ;;  %v416_v42 = vld [vmem:[%s4209_s4 + $0x5e0] sm:$0xff] }
 0x12b   :  { %v224_v49 = vsel %vm194_vm0, %v178_v18, %v1758_v45  ;;  %v368_v18 = vld [vmem:[%s4209_s4 + $0x460] sm:$0xff]  ;;  %vm1457_vm0 = vcmask 564224  }
 0x12c   :  { %v2566_v51 = vpop.eup %2565  ;;  %v225_v52 = vsel %vm195_vm1, %v180_v20, %v1759_v48  ;;  %232 = vst [vmem:[#allocation2] sm:$0xff] %v224_v49  ;;  %v2194_v24 = vpack.c.bf16 %v370_v19, %v368_v18  ;;  %v380_v45 = vld [vmem:[%s4209_s4 + $0x4c0] sm:$0xff]  ;;  %v387_v48 = vld [vmem:[%s4209_s4 + $0x4f8] sm:$0xff]  ;;  %v402_v19 = vld [vmem:[%s4209_s4 + $0x570] sm:$0xff]  ;;  %vm1680_vm1 = vcmask 66608  }
 0x12d   :  { %v2568_v56 = vpop.eup %2567  ;;  %233 = vst [vmem:[#allocation2 + $0x8] sm:$0xff] %v225_v52  ;;  %561 = vmatprep.mubr.f32.mxu1 %v225_v52  ;;  %v1760_v59 = vadd.f32 -1.0, %v2566_v51  ;;  %v384_v51 = vld [vmem:[%s4209_s4 + $0x4e0] sm:$0xff]  ;;  %v386_v52 = vld [vmem:[%s4209_s4 + $0x4f0] sm:$0xff] }
 0x12e   :  { %562 = vmatmul.mubr.f32.vlgmr.msra.gmra.mrb[0].mxu1 %v224_v49  ;;  %v1761_v60 = vadd.f32 -1.0, %v2568_v56  ;;  %v2206_v49 = vpack.c.bf16 %v382_v46, %v380_v45  ;;  %v2210_v55 = vpack.c.bf16 %v386_v52, %v384_v51  ;;  %v400_v18 = vld [vmem:[%s4209_s4 + $0x560] sm:$0xff]  ;;  %v423_v45 = vld [vmem:[%s4209_s4 + $0x618] sm:$0xff]  ;;  %v422_v51 = vld [vmem:[%s4209_s4 + $0x610] sm:$0xff] }
 0x12f   :  { %2183 = vmatpush1.bf16.msra.mxu1 %v2182_v50  ;;  %v3110_v62 = vsel %vm196_vm2, %v184_v25, %v1760_v59  ;;  %v2208_v50 = vpack.c.bf16 %v387_v48, %v385_v47  ;;  %v393_v59 = vld [vmem:[%s4209_s4 + $0x528] sm:$0xff]  ;;  %v2226_v22 = vpack.c.bf16 %v402_v19, %v400_v18  ;;  %vm1655_vm2 = vcmask 17408  }
 0x130   :  { %v2570_v63 = vpop.eup %2569  ;;  %2185 = vmatprep.subr.bf16.mxu1 %v2184_v53  ;;  %v3112_v1 = vsel %vm197_vm3, %v186_v28, %v1761_v60  ;;  %v824_v28 = vld [vmem:[%s4212_s5] sm:$0xff]  ;;  %v389_v53 = vld [vmem:[%s4209_s4 + $0x508] sm:$0xff]  ;;  %v395_v60 = vld [vmem:[%s4209_s4 + $0x538] sm:$0xff]  ;;  %vm1726_vm3 = vcmask 23552  }
 0x131   :  { %v2572_v4 = vpop.eup %2571  ;;  %567 = vmatprep.mubr.f32.mxu1 %v3112_v1  ;;  %v1762_v7 = vadd.f32 -1.0, %v2570_v63  ;;  %v259_v15 = vrot.slane %v3112_v1, 2  ;;  %v2212_v56 = vpack.c.bf16 %v391_v54, %v389_v53  ;;  %v2216_v63 = vpack.c.bf16 %v395_v60, %v393_v59  ;;  %v425_v54 = vld [vmem:[%s4209_s4 + $0x628] sm:$0xff]  ;;  %v424_v60 = vld [vmem:[%s4209_s4 + $0x620] sm:$0xff] }
 0x132   :  { %568 = vmatmul.mubr.f32.gmra.mrb[2].mxu1 %v3110_v62  ;;  %v1763_v8 = vadd.f32 -1.0, %v2572_v4  ;;  %v399_v4 = vld [vmem:[%s4209_s4 + $0x558] sm:$0xff]  ;;  %v256_v53 = vrot.slane %v3110_v62, 2  ;;  %v280_v18 = vrot.slane %v3112_v1, 4  ;;  %v826_v1 = vld [vmem:[%s4212_s5 + $0x10] sm:$0xff] }
 0x133   :  { %2187 = vmatpush1.bf16.msra.mxu1 %v2186_v61  ;;  %v228_v13 = vsel %vm198_vm4, %v190_v33, %v1762_v7  ;;  %v825_v33 = vld [vmem:[%s4212_s5 + $0x8] sm:$0xff]  ;;  %v2214_v61 = vpack.c.bf16 %v390_v58, %v388_v57  ;;  %v2220_v6 = vpack.c.bf16 %v399_v4, %v397_v3  ;;  %v396_v7 = vld [vmem:[%s4209_s4 + $0x540] sm:$0xff]  ;;  %v431_v3 = vld [vmem:[%s4209_s4 + $0x658] sm:$0xff]  ;;  %vm1728_vm4 = vcmask 48128  }
 0x134   :  { %2189 = vmatprep.subr.bf16.mxu1 %v2188_v0  ;;  %v229_v17 = vsel %vm199_vm5, %v192_v36, %v1763_v8  ;;  %236 = vst [vmem:[#allocation2 + $0x20] sm:$0x3] %v228_v13  ;;  %v239_v20 = vld [vmem:[#allocation2 + $0x8] sm:$0xfc]  ;;  %v2310_v36 = vpack.c.bf16 %v825_v33, %v824_v28  ;;  %v392_v0 = vld [vmem:[%s4209_s4 + $0x520] sm:$0xff]  ;;  %v398_v8 = vld [vmem:[%s4209_s4 + $0x550] sm:$0xff] }
 0x135   :  { %237 = vst [vmem:[#allocation2 + $0x28] sm:$0x3] %v229_v17  ;;  %573 = vmatprep.mubr.f32.mxu1 %v229_v17  ;;  %v258_v21 = vrot.slane %v239_v20, 2  ;;  %v2218_v5 = vpack.c.bf16 %v394_v2, %v392_v0  ;;  %v405_v20 = vld [vmem:[%s4209_s4 + $0x588] sm:$0xff]  ;;  %v415_v33 = vld [vmem:[%s4209_s4 + $0x5d8] sm:$0xff]  ;;  %vm1730_vm5 = vcmask 56320  }
 0x136   :  { %574 = vmatmul.mubr.f32.gmra.mrb[4].mxu1 %v228_v13  ;;  %2311 = vmatpush3.bf16.msra.mxu0 %v2310_v36  ;;  %v403_v13 = vld [vmem:[%s4209_s4 + $0x578] sm:$0xff]  ;;  %v2236_v35 = vpack.c.bf16 %v415_v33, %v413_v32  ;;  %v412_v36 = vld [vmem:[%s4209_s4 + $0x5c0] sm:$0xff]  ;;  %v429_v2 = vld [vmem:[%s4209_s4 + $0x648] sm:$0xff]  ;;  %v2264_v33 = vpack.c.bf16 %v443_v31, %v441_v30 }
 0x137   :  { %2191 = vmatpush1.bf16.msra.mxu1 %v2190_v10  ;;  %v260_v25 = vsel %vm254_vm6, %v258_v21, %v259_v15  ;;  %v401_v10 = vld [vmem:[%s4209_s4 + $0x568] sm:$0xff]  ;;  %v407_v21 = vld [vmem:[%s4209_s4 + $0x598] sm:$0xff]  ;;  %v238_v46 = vld [vmem:[#allocation2] sm:$0xfc] }
 0x138   :  { %2193 = vmatprep.subr.bf16.mxu1 %v2192_v16  ;;  %644 = vmatprep.mubr.f32.mxu1 %v260_v25  ;;  %v2222_v16 = vpack.c.bf16 %v398_v8, %v396_v7  ;;  %v2224_v17 = vpack.c.bf16 %v403_v13, %v401_v10  ;;  %v2228_v23 = vpack.c.bf16 %v407_v21, %v405_v20  ;;  %v406_v25 = vld [vmem:[%s4209_s4 + $0x590] sm:$0xff]  ;;  %v255_v52 = vrot.slane %v238_v46, 2  ;;  %v428_v8 = vld [vmem:[%s4209_s4 + $0x640] sm:$0xff] }
 0x139   :  { %v2252_v7 = vpack.c.bf16 %v431_v3, %v429_v2  ;;  %v430_v10 = vld [vmem:[%s4209_s4 + $0x650] sm:$0xff]  ;;  %v432_v21 = vld [vmem:[%s4209_s4 + $0x660] sm:$0xff] }
 0x13a   :  { %v2254_v19 = vpack.c.bf16 %v430_v10, %v428_v8  ;;  %v448_v46 = vld [vmem:[%s4209_s4 + $0x6e0] sm:$0xff]  ;;  %v462_v3 = vld [vmem:[%s4209_s4 + $0x750] sm:$0xff] }
 0x13b   :  { %2195 = vmatpush1.bf16.msra.mxu1 %v2194_v24  ;;  %v404_v24 = vld [vmem:[%s4209_s4 + $0x580] sm:$0xff]  ;;  %v466_v10 = vld [vmem:[%s4209_s4 + $0x770] sm:$0xff] }
 0x13c   :  { %2197 = vmatprep.subr.bf16.mxu1 %v2196_v29  ;;  %v2230_v28 = vpack.c.bf16 %v406_v25, %v404_v24  ;;  %v2232_v29 = vpack.c.bf16 %v411_v27, %v409_v26  ;;  %v243_v48 = vld [vmem:[#allocation2 + $0x28] sm:$0xf]  ;;  %v242_v57 = vld [vmem:[#allocation2 + $0x20] sm:$0xf]  ;;  %v439_v24 = vld [vmem:[%s4209_s4 + $0x698] sm:$0xff] }
 0x13d   :  { %v261_v0 = vrot.slane %v242_v57, 2  ;;  %v460_v2 = vld [vmem:[%s4209_s4 + $0x740] sm:$0xff] }
 0x13e   :  { %v464_v8 = vld [vmem:[%s4209_s4 + $0x760] sm:$0xff] }
 0x13f   :  { %2199 = vmatpush1.bf16.msra.mxu1 %v2198_v37  ;;  %v414_v37 = vld [vmem:[%s4209_s4 + $0x5d0] sm:$0xff]  ;;  %v262_v13 = vsel %vm254_vm6, %v256_v53, %v261_v0  ;;  %v476_v31 = vld [vmem:[%s4209_s4 + $0x7c0] sm:$0xff] }
 0x140   :  { %2201 = vmatprep.subr.bf16.mxu1 %v2200_v38  ;;  %v417_v38 = vld [vmem:[%s4209_s4 + $0x5e8] sm:$0xff]  ;;  %v2238_v40 = vpack.c.bf16 %v414_v37, %v412_v36  ;;  %v447_v37 = vld [vmem:[%s4209_s4 + $0x6d8] sm:$0xff] }
 0x141   :  { %v2240_v41 = vpack.c.bf16 %v419_v39, %v417_v38  ;;  %v445_v36 = vld [vmem:[%s4209_s4 + $0x6c8] sm:$0xff] }
 0x142   :  { %v2268_v39 = vpack.c.bf16 %v447_v37, %v445_v36  ;;  %v480_v37 = vld [vmem:[%s4209_s4 + $0x7e0] sm:$0xff] }
 0x143   :  { %2203 = vmatpush1.bf16.msra.mxu1 %v2202_v43  ;;  %v418_v43 = vld [vmem:[%s4209_s4 + $0x5f0] sm:$0xff] }
 0x144   :  { %2205 = vmatprep.subr.bf16.mxu1 %v2204_v44  ;;  %v421_v44 = vld [vmem:[%s4209_s4 + $0x608] sm:$0xff]  ;;  %v2242_v47 = vpack.c.bf16 %v418_v43, %v416_v42  ;;  %v451_v43 = vld [vmem:[%s4209_s4 + $0x6f8] sm:$0xff] }
 0x145   :  { %v449_v42 = vld [vmem:[%s4209_s4 + $0x6e8] sm:$0xff] }
 0x147   :  { %2207 = vmatpush1.bf16.msra.mxu1 %v2206_v49  ;;  %v2244_v49 = vpack.c.bf16 %v423_v45, %v421_v44  ;;  %v2272_v45 = vpack.c.bf16 %v451_v43, %v449_v42  ;;  %v277_v43 = vrot.slane %v3110_v62, 4  ;;  %v842_v62 = vld [vmem:[%s4212_s5 + $0x90] sm:$0xff] }
 0x148   :  { %2209 = vmatprep.subr.bf16.mxu1 %v2208_v50  ;;  %v420_v50 = vld [vmem:[%s4209_s4 + $0x600] sm:$0xff] }
 0x149   :  { %v2246_v58 = vpack.c.bf16 %v422_v51, %v420_v50 }
 0x14b   :  { %2211 = vmatpush1.bf16.msra.mxu1 %v2210_v55  ;;  %v427_v55 = vld [vmem:[%s4209_s4 + $0x638] sm:$0xff] }
 0x14c   :  { %2213 = vmatprep.subr.bf16.mxu1 %v2212_v56  ;;  %v263_v56 = vrot.slane %v243_v48, 2  ;;  %v2248_v59 = vpack.c.bf16 %v427_v55, %v425_v54  ;;  %v453_v48 = vld [vmem:[%s4209_s4 + $0x708] sm:$0xff]  ;;  %v459_v55 = vld [vmem:[%s4209_s4 + $0x738] sm:$0xff] }
 0x14d   :  { %v457_v54 = vld [vmem:[%s4209_s4 + $0x728] sm:$0xff] }
 0x14e   :  { %v264_v4 = vsel %vm254_vm6, %v259_v15, %v263_v56  ;;  %v433_v15 = vld [vmem:[%s4209_s4 + $0x668] sm:$0xff]  ;;  %v2280_v57 = vpack.c.bf16 %v459_v55, %v457_v54 }
 0x14f   :  { %2215 = vmatpush1.bf16.msra.mxu1 %v2214_v61  ;;  %v426_v61 = vld [vmem:[%s4209_s4 + $0x630] sm:$0xff]  ;;  %v1001_v54 = vld [vmem:[%s4212_s5 + $0x588] sm:$0xff] }
 0x150   :  { %2217 = vmatprep.subr.bf16.mxu1 %v2216_v63  ;;  %v257_v63 = vsel %vm254_vm6, %v255_v52, %v256_v53  ;;  %v452_v52 = vld [vmem:[%s4209_s4 + $0x700] sm:$0xff]  ;;  %v454_v53 = vld [vmem:[%s4209_s4 + $0x710] sm:$0xff]  ;;  %vm1732_vm6 = vcmask 80896  }
 0x153   :  { %2219 = vmatpush1.bf16.msra.mxu1 %v2218_v5  ;;  %v2250_v5 = vpack.c.bf16 %v426_v61, %v424_v60  ;;  %v461_v60 = vld [vmem:[%s4209_s4 + $0x748] sm:$0xff]  ;;  %v463_v61 = vld [vmem:[%s4209_s4 + $0x758] sm:$0xff] }
 0x154   :  { %2221 = vmatprep.subr.bf16.mxu1 %v2220_v6  ;;  %v245_v6 = vld [vmem:[#allocation2 + $0x8] sm:$0xf0] }
 0x157   :  { %2223 = vmatpush1.bf16.msra.mxu1 %v2222_v16  ;;  %v435_v16 = vld [vmem:[%s4209_s4 + $0x678] sm:$0xff] }
 0x158   :  { %2225 = vmatprep.subr.bf16.mxu1 %v2224_v17  ;;  %v279_v17 = vrot.slane %v245_v6, 4  ;;  %v2256_v20 = vpack.c.bf16 %v435_v16, %v433_v15  ;;  %v2286_v6 = vpack.c.bf16 %v462_v3, %v460_v2  ;;  %v471_v15 = vld [vmem:[%s4209_s4 + $0x798] sm:$0xff]  ;;  %v2290_v16 = vpack.c.bf16 %v466_v10, %v464_v8  ;;  %v1002_v3 = vld [vmem:[%s4212_s5 + $0x590] sm:$0xff] }
 0x159   :  { %v986_v8 = vld [vmem:[%s4212_s5 + $0x510] sm:$0xff] }
 0x15a   :  { %v281_v25 = vsel %vm275_vm7, %v279_v17, %v280_v18 }
 0x15b   :  { %2227 = vmatpush1.bf16.msra.mxu1 %v2226_v22  ;;  %v434_v22 = vld [vmem:[%s4209_s4 + $0x670] sm:$0xff] }
 0x15c   :  { %2229 = vmatprep.subr.bf16.mxu1 %v2228_v23  ;;  %v437_v23 = vld [vmem:[%s4209_s4 + $0x688] sm:$0xff]  ;;  %v2258_v26 = vpack.c.bf16 %v434_v22, %v432_v21  ;;  %v475_v22 = vld [vmem:[%s4209_s4 + $0x7b8] sm:$0xff] }
 0x15d   :  { %v2260_v27 = vpack.c.bf16 %v439_v24, %v437_v23  ;;  %v473_v21 = vld [vmem:[%s4209_s4 + $0x7a8] sm:$0xff] }
 0x15e   :  { %v2296_v24 = vpack.c.bf16 %v475_v22, %v473_v21  ;;  %v1005_v21 = vld [vmem:[%s4212_s5 + $0x5a8] sm:$0xff] }
 0x15f   :  { %2231 = vmatpush1.bf16.msra.mxu1 %v2230_v28  ;;  %v436_v28 = vld [vmem:[%s4209_s4 + $0x680] sm:$0xff] }
 0x160   :  { %2233 = vmatprep.subr.bf16.mxu1 %v2232_v29  ;;  %v438_v29 = vld [vmem:[%s4209_s4 + $0x690] sm:$0xff] }
 0x161   :  { %v2262_v32 = vpack.c.bf16 %v438_v29, %v436_v28  ;;  %v479_v28 = vld [vmem:[%s4209_s4 + $0x7d8] sm:$0xff] }
 0x163   :  { %2235 = vmatpush1.bf16.msra.mxu1 %v2234_v34  ;;  %v440_v34 = vld [vmem:[%s4209_s4 + $0x6a0] sm:$0xff] }
 0x164   :  { %2237 = vmatprep.subr.bf16.mxu1 %v2236_v35  ;;  %v442_v35 = vld [vmem:[%s4209_s4 + $0x6b0] sm:$0xff] }
 0x165   :  { %v2266_v38 = vpack.c.bf16 %v442_v35, %v440_v34  ;;  %v483_v34 = vld [vmem:[%s4209_s4 + $0x7f8] sm:$0xff] }
 0x167   :  { %2239 = vmatpush1.bf16.msra.mxu1 %v2238_v40  ;;  %v444_v40 = vld [vmem:[%s4209_s4 + $0x6c0] sm:$0xff] }
 0x168   :  { %2241 = vmatprep.subr.bf16.mxu1 %v2240_v41  ;;  %v446_v41 = vld [vmem:[%s4209_s4 + $0x6d0] sm:$0xff] }
 0x169   :  { %v2270_v44 = vpack.c.bf16 %v446_v41, %v444_v40  ;;  %v247_v41 = vld [vmem:[#allocation2 + $0x28] sm:$0x3f] }
 0x16b   :  { %2243 = vmatpush1.bf16.msra.mxu1 %v2242_v47  ;;  %v450_v47 = vld [vmem:[%s4209_s4 + $0x6f0] sm:$0xff] }
 0x16c   :  { %2245 = vmatprep.subr.bf16.mxu1 %v2244_v49  ;;  %v455_v49 = vld [vmem:[%s4209_s4 + $0x718] sm:$0xff]  ;;  %v2274_v50 = vpack.c.bf16 %v450_v47, %v448_v46 }
 0x16d   :  { %v2276_v51 = vpack.c.bf16 %v455_v49, %v453_v48 }
 0x16e   :  { %645 = vmatmul.mubr.f32.vlgmr.msra.gmra.mrb[0].mxu1 %v257_v63 }
 0x16f   :  { %650 = vmatprep.mubr.f32.mxu1 %v264_v4  ;;  %2247 = vmatpush1.bf16.msra.mxu1 %v2246_v58  ;;  %v456_v58 = vld [vmem:[%s4209_s4 + $0x720] sm:$0xff]  ;;  %v465_v4 = vld [vmem:[%s4209_s4 + $0x768] sm:$0xff] }
 0x170   :  { %2249 = vmatprep.subr.bf16.mxu1 %v2248_v59  ;;  %v458_v59 = vld [vmem:[%s4209_s4 + $0x730] sm:$0xff] }
 0x171   :  { %v2282_v63 = vpack.c.bf16 %v458_v59, %v456_v58  ;;  %v984_v58 = vld [vmem:[%s4212_s5 + $0x500] sm:$0xff] }
 0x172   :  { %651 = vmatmul.mubr.f32.gmra.mrb[2].mxu1 %v262_v13  ;;  %v469_v13 = vld [vmem:[%s4209_s4 + $0x788] sm:$0xff] }
 0x173   :  { %656 = vmatprep.mubr.f32.mxu1 %v263_v56  ;;  %2251 = vmatpush1.bf16.msra.mxu1 %v2250_v5  ;;  %v2278_v56 = vpack.c.bf16 %v454_v53, %v452_v52  ;;  %v467_v5 = vld [vmem:[%s4209_s4 + $0x778] sm:$0xff]  ;;  %v2292_v17 = vpack.c.bf16 %v471_v15, %v469_v13  ;;  %v1000_v53 = vld [vmem:[%s4212_s5 + $0x580] sm:$0xff]  ;;  %v830_v15 = vld [vmem:[%s4212_s5 + $0x30] sm:$0xff] }
 0x174   :  { %2253 = vmatprep.subr.bf16.mxu1 %v2252_v7  ;;  %v2288_v7 = vpack.c.bf16 %v467_v5, %v465_v4  ;;  %v2468_v55 = vpack.c.bf16 %v1001_v54, %v1000_v53  ;;  %v1003_v4 = vld [vmem:[%s4212_s5 + $0x598] sm:$0xff]  ;;  %v1010_v53 = vld [vmem:[%s4212_s5 + $0x5d0] sm:$0xff] }
 0x175   :  { %v2472_v5 = vpack.c.bf16 %v1003_v4, %v1002_v3  ;;  %v987_v13 = vld [vmem:[%s4212_s5 + $0x518] sm:$0xff]  ;;  %v1012_v3 = vld [vmem:[%s4212_s5 + $0x5e0] sm:$0xff]  ;;  %v1013_v4 = vld [vmem:[%s4212_s5 + $0x5e8] sm:$0xff] }
 0x176   :  { %657 = vmatmul.mubr.f32.gmra.mrb[4].mxu1 %v261_v0  ;;  %v2284_v0 = vpack.c.bf16 %v463_v61, %v461_v60  ;;  %v985_v60 = vld [vmem:[%s4212_s5 + $0x508] sm:$0xff]  ;;  %v828_v61 = vld [vmem:[%s4212_s5 + $0x20] sm:$0xff]  ;;  %v1011_v54 = vld [vmem:[%s4212_s5 + $0x5d8] sm:$0xff] }
 0x177   :  { %2255 = vmatpush1.bf16.msra.mxu1 %v2254_v19  ;;  %727 = vmatprep.mubr.f32.mxu1 %v281_v25  ;;  %v468_v19 = vld [vmem:[%s4209_s4 + $0x780] sm:$0xff] }
 0x178   :  { %2257 = vmatprep.subr.bf16.mxu1 %v2256_v20  ;;  %v470_v20 = vld [vmem:[%s4209_s4 + $0x790] sm:$0xff]  ;;  %v472_v25 = vld [vmem:[%s4209_s4 + $0x7a0] sm:$0xff] }
 0x179   :  { %v2294_v23 = vpack.c.bf16 %v470_v20, %v468_v19  ;;  %v1004_v20 = vld [vmem:[%s4212_s5 + $0x5a0] sm:$0xff] }
 0x17a   :  { %v2476_v22 = vpack.c.bf16 %v1005_v21, %v1004_v20  ;;  %v998_v20 = vld [vmem:[%s4212_s5 + $0x570] sm:$0xff]  ;;  %v999_v21 = vld [vmem:[%s4212_s5 + $0x578] sm:$0xff] }
 0x17b   :  { %2259 = vmatpush1.bf16.msra.mxu1 %v2258_v26  ;;  %v474_v26 = vld [vmem:[%s4209_s4 + $0x7b0] sm:$0xff] }
 0x17c   :  { %2261 = vmatprep.subr.bf16.mxu1 %v2260_v27  ;;  %v477_v27 = vld [vmem:[%s4209_s4 + $0x7c8] sm:$0xff]  ;;  %v2298_v29 = vpack.c.bf16 %v474_v26, %v472_v25  ;;  %v988_v25 = vld [vmem:[%s4212_s5 + $0x520] sm:$0xff] }
 0x17d   :  { %v2300_v30 = vpack.c.bf16 %v479_v28, %v477_v27  ;;  %v989_v27 = vld [vmem:[%s4212_s5 + $0x528] sm:$0xff]  ;;  %v832_v28 = vld [vmem:[%s4212_s5 + $0x40] sm:$0xff] }
 0x17f   :  { %2263 = vmatpush1.bf16.msra.mxu1 %v2262_v32  ;;  %v478_v32 = vld [vmem:[%s4209_s4 + $0x7d0] sm:$0xff] }
 0x180   :  { %2265 = vmatprep.subr.bf16.mxu1 %v2264_v33  ;;  %v481_v33 = vld [vmem:[%s4209_s4 + $0x7e8] sm:$0xff]  ;;  %v2302_v35 = vpack.c.bf16 %v478_v32, %v476_v31  ;;  %v1006_v32 = vld [vmem:[%s4212_s5 + $0x5b0] sm:$0xff] }
 0x181   :  { %v2304_v36 = vpack.c.bf16 %v483_v34, %v481_v33  ;;  %v1007_v33 = vld [vmem:[%s4212_s5 + $0x5b8] sm:$0xff] }
 0x182   :  { %v2480_v34 = vpack.c.bf16 %v1007_v33, %v1006_v32 }
 0x183   :  { %2267 = vmatpush1.bf16.msra.mxu1 %v2266_v38  ;;  %v482_v38 = vld [vmem:[%s4209_s4 + $0x7f0] sm:$0xff] }
 0x184   :  { %2269 = vmatprep.subr.bf16.mxu1 %v2268_v39  ;;  %v244_v39 = vld [vmem:[#allocation2] sm:$0xf0]  ;;  %v2306_v40 = vpack.c.bf16 %v482_v38, %v480_v37  ;;  %v990_v37 = vld [vmem:[%s4212_s5 + $0x530] sm:$0xff] }
 0x185   :  { %v276_v42 = vrot.slane %v244_v39, 4  ;;  %v991_v39 = vld [vmem:[%s4212_s5 + $0x538] sm:$0xff] }
 0x187   :  { %2271 = vmatpush1.bf16.msra.mxu1 %v2270_v44  ;;  %v284_v44 = vrot.slane %v247_v41, 4  ;;  %v278_v46 = vsel %vm275_vm7, %v276_v42, %v277_v43  ;;  %v835_v41 = vld [vmem:[%s4212_s5 + $0x58] sm:$0xff]  ;;  %v2482_v42 = vpack.c.bf16 %v991_v39, %v990_v37 }
 0x188   :  { %2273 = vmatprep.subr.bf16.mxu1 %v2272_v45  ;;  %v246_v45 = vld [vmem:[#allocation2 + $0x20] sm:$0x3f] }
 0x189   :  { %v282_v47 = vrot.slane %v246_v45, 4  ;;  %v285_v48 = vsel %vm275_vm7, %v280_v18, %v284_v44  ;;  %v827_v18 = vld [vmem:[%s4212_s5 + $0x18] sm:$0xff]  ;;  %v1009_v45 = vld [vmem:[%s4212_s5 + $0x5c8] sm:$0xff] }
 0x18a   :  { %v2314_v52 = vpack.c.bf16 %v827_v18, %v826_v1  ;;  %v837_v1 = vld [vmem:[%s4212_s5 + $0x68] sm:$0xff] }
 0x18b   :  { %2275 = vmatpush1.bf16.msra.mxu1 %v2274_v50  ;;  %v283_v49 = vsel %vm275_vm7, %v277_v43, %v282_v47  ;;  %v843_v50 = vld [vmem:[%s4212_s5 + $0x98] sm:$0xff]  ;;  %vm1734_vm7 = vcmask 105472  }
 0x18c   :  { %2277 = vmatprep.subr.bf16.mxu1 %v2276_v51  ;;  %v2312_v51 = vpack.c.bf16 %v843_v50, %v842_v62  ;;  %v993_v50 = vld [vmem:[%s4212_s5 + $0x548] sm:$0xff] }
 0x18e   :  { %2313 = vmatprep.subr.bf16.mxu0 %v2312_v51  ;;  %v836_v51 = vld [vmem:[%s4212_s5 + $0x60] sm:$0xff] }
 0x18f   :  { %2279 = vmatpush1.bf16.msra.mxu1 %v2278_v56  ;;  %2315 = vmatpush3.bf16.msra.mxu0 %v2314_v52  ;;  %v844_v56 = vld [vmem:[%s4212_s5 + $0xa0] sm:$0xff]  ;;  %v2334_v52 = vpack.c.bf16 %v837_v1, %v836_v51 }
 0x190   :  { %2281 = vmatprep.subr.bf16.mxu1 %v2280_v57  ;;  %v845_v57 = vld [vmem:[%s4212_s5 + $0xa8] sm:$0xff] }
 0x191   :  { %v2316_v59 = vpack.c.bf16 %v845_v57, %v844_v56  ;;  %v854_v56 = vld [vmem:[%s4212_s5 + $0xf0] sm:$0xff]  ;;  %v855_v57 = vld [vmem:[%s4212_s5 + $0xf8] sm:$0xff] }
 0x193   :  { %2283 = vmatpush1.bf16.msra.mxu1 %v2282_v63  ;;  %v829_v63 = vld [vmem:[%s4212_s5 + $0x28] sm:$0xff]  ;;  %2317 = vmatprep.subr.bf16.mxu0 %v2316_v59  ;;  %v2336_v59 = vpack.c.bf16 %v855_v57, %v854_v56  ;;  %v856_v57 = vld [vmem:[%s4212_s5 + $0x100] sm:$0xff] }
 0x194   :  { %2285 = vmatprep.subr.bf16.mxu1 %v2284_v0  ;;  %v2470_v0 = vpack.c.bf16 %v985_v60, %v984_v58  ;;  %v2318_v2 = vpack.c.bf16 %v829_v63, %v828_v61  ;;  %v994_v58 = vld [vmem:[%s4212_s5 + $0x550] sm:$0xff]  ;;  %v995_v60 = vld [vmem:[%s4212_s5 + $0x558] sm:$0xff] }
 0x195   :  { %v838_v61 = vld [vmem:[%s4212_s5 + $0x70] sm:$0xff]  ;;  %v839_v63 = vld [vmem:[%s4212_s5 + $0x78] sm:$0xff] }
 0x196   :  { %2319 = vmatpush3.bf16.msra.mxu0 %v2318_v2  ;;  %v2338_v2 = vpack.c.bf16 %v839_v63, %v838_v61  ;;  %v875_v61 = vld [vmem:[%s4212_s5 + $0x198] sm:$0xff] }
 0x197   :  { %2287 = vmatpush1.bf16.msra.mxu1 %v2286_v6  ;;  %v846_v6 = vld [vmem:[%s4212_s5 + $0xb0] sm:$0xff] }
 0x198   :  { %2289 = vmatprep.subr.bf16.mxu1 %v2288_v7  ;;  %v847_v7 = vld [vmem:[%s4212_s5 + $0xb8] sm:$0xff] }
 0x199   :  { %v2320_v10 = vpack.c.bf16 %v847_v7, %v846_v6  ;;  %v872_v6 = vld [vmem:[%s4212_s5 + $0x180] sm:$0xff]  ;;  %v873_v7 = vld [vmem:[%s4212_s5 + $0x188] sm:$0xff] }
 0x19b   :  { %2291 = vmatpush1.bf16.msra.mxu1 %v2290_v16  ;;  %v831_v16 = vld [vmem:[%s4212_s5 + $0x38] sm:$0xff]  ;;  %2321 = vmatprep.subr.bf16.mxu0 %v2320_v10  ;;  %v2340_v10 = vpack.c.bf16 %v873_v7, %v872_v6 }
 0x19c   :  { %2293 = vmatprep.subr.bf16.mxu1 %v2292_v17  ;;  %v2474_v17 = vpack.c.bf16 %v987_v13, %v986_v8  ;;  %v2322_v19 = vpack.c.bf16 %v831_v16, %v830_v15  ;;  %v996_v8 = vld [vmem:[%s4212_s5 + $0x560] sm:$0xff]  ;;  %v997_v13 = vld [vmem:[%s4212_s5 + $0x568] sm:$0xff]  ;;  %v1014_v16 = vld [vmem:[%s4212_s5 + $0x5f0] sm:$0xff] }
 0x19d   :  { %v2494_v15 = vpack.c.bf16 %v997_v13, %v996_v8  ;;  %v876_v8 = vld [vmem:[%s4212_s5 + $0x1a0] sm:$0xff] }
 0x19e   :  { %2323 = vmatpush3.bf16.msra.mxu0 %v2322_v19 }
 0x19f   :  { %2295 = vmatpush1.bf16.msra.mxu1 %v2294_v23  ;;  %v848_v23 = vld [vmem:[%s4212_s5 + $0xc0] sm:$0xff] }
 0x1a0   :  { %2297 = vmatprep.subr.bf16.mxu1 %v2296_v24  ;;  %v849_v24 = vld [vmem:[%s4212_s5 + $0xc8] sm:$0xff] }
 0x1a1   :  { %v2324_v26 = vpack.c.bf16 %v849_v24, %v848_v23  ;;  %v1764_v23 = vld [vmem:[%s4211_s7 + $0x1] ss:$8 sm:$0x3] }
 0x1a2   :  { %v490_v24 = vrot.slane %v1764_v23, %v103_v12 }
 0x1a3   :  { %2299 = vmatpush1.bf16.msra.mxu1 %v2298_v29  ;;  %v833_v29 = vld [vmem:[%s4212_s5 + $0x48] sm:$0xff]  ;;  %2325 = vmatprep.subr.bf16.mxu0 %v2324_v26 }
 0x1a4   :  { %2301 = vmatprep.subr.bf16.mxu1 %v2300_v30  ;;  %v2478_v30 = vpack.c.bf16 %v989_v27, %v988_v25  ;;  %v2326_v31 = vpack.c.bf16 %v833_v29, %v832_v28  ;;  %v494_v25 = vrot.slane %v1764_v23, %v107_v14  ;;  %v879_v23 = vld [vmem:[%s4212_s5 + $0x1b8] sm:$0xff] }
 0x1a6   :  { %2327 = vmatpush3.bf16.msra.mxu0 %v2326_v31 }
 0x1a7   :  { %2303 = vmatpush1.bf16.msra.mxu1 %v2302_v35  ;;  %v850_v35 = vld [vmem:[%s4212_s5 + $0xd0] sm:$0xff] }
 0x1a8   :  { %2305 = vmatprep.subr.bf16.mxu1 %v2304_v36  ;;  %v851_v36 = vld [vmem:[%s4212_s5 + $0xd8] sm:$0xff] }
 0x1a9   :  { %v2328_v38 = vpack.c.bf16 %v851_v36, %v850_v35 }
 0x1ab   :  { %2307 = vmatpush1.bf16.msra.mxu1 %v2306_v40  ;;  %v834_v40 = vld [vmem:[%s4212_s5 + $0x50] sm:$0xff]  ;;  %2329 = vmatprep.subr.bf16.mxu0 %v2328_v38 }
 0x1ac   :  { %2469 = vmatprep.subr.bf16.mxu1 %v2468_v55  ;;  %v2330_v43 = vpack.c.bf16 %v835_v41, %v834_v40  ;;  %v2488_v55 = vpack.c.bf16 %v1011_v54, %v1010_v53 }
 0x1ae   :  { %728 = vmatmul.mubr.f32.vlgmr.msra.gmra.mrb[0].mxu1 %v278_v46  ;;  %2331 = vmatpush3.bf16.msra.mxu0 %v2330_v43 }
 0x1af   :  { %733 = vmatprep.mubr.f32.mxu1 %v285_v48  ;;  %2471 = vmatpush3.bf16.msra.mxu1 %v2470_v0  ;;  %v853_v48 = vld [vmem:[%s4212_s5 + $0xe8] sm:$0xff]  ;;  %v2490_v0 = vpack.c.bf16 %v995_v60, %v994_v58  ;;  %v874_v60 = vld [vmem:[%s4212_s5 + $0x190] sm:$0xff] }
 0x1b0   :  { %2473 = vmatprep.subr.bf16.mxu1 %v2472_v5  ;;  %v2492_v5 = vpack.c.bf16 %v1013_v4, %v1012_v3  ;;  %v857_v58 = vld [vmem:[%s4212_s5 + $0x108] sm:$0xff]  ;;  %v2344_v4 = vpack.c.bf16 %v875_v61, %v874_v60  ;;  %v890_v60 = vld [vmem:[%s4212_s5 + $0x210] sm:$0xff]  ;;  %v891_v61 = vld [vmem:[%s4212_s5 + $0x218] sm:$0xff] }
 0x1b1   :  { %v2342_v63 = vpack.c.bf16 %v857_v58, %v856_v57 }
 0x1b2   :  { %734 = vmatmul.mubr.f32.gmra.mrb[2].mxu1 %v283_v49  ;;  %v992_v49 = vld [vmem:[%s4212_s5 + $0x540] sm:$0xff] }
 0x1b3   :  { %739 = vmatprep.mubr.f32.mxu1 %v284_v44  ;;  %2475 = vmatpush3.bf16.msra.mxu1 %v2474_v17  ;;  %v1008_v44 = vld [vmem:[%s4212_s5 + $0x5c0] sm:$0xff]  ;;  %v2486_v18 = vpack.c.bf16 %v993_v50, %v992_v49  ;;  %v1015_v17 = vld [vmem:[%s4212_s5 + $0x5f8] sm:$0xff] }
 0x1b4   :  { %2477 = vmatprep.subr.bf16.mxu1 %v2476_v22  ;;  %v2484_v46 = vpack.c.bf16 %v1009_v45, %v1008_v44  ;;  %v2496_v19 = vpack.c.bf16 %v1015_v17, %v1014_v16  ;;  %v2498_v22 = vpack.c.bf16 %v999_v21, %v998_v20  ;;  %v861_v20 = vld [vmem:[%s4212_s5 + $0x128] sm:$0xff] }
 0x1b6   :  { %740 = vmatmul.mubr.f32.gmra.mrb[4].mxu1 %v282_v47  ;;  %v852_v47 = vld [vmem:[%s4212_s5 + $0xe0] sm:$0xff] }
 0x1b7   :  { %2479 = vmatpush3.bf16.msra.mxu1 %v2478_v30  ;;  %v2332_v62 = vpack.c.bf16 %v853_v48, %v852_v47 }
 0x1b8   :  { %2481 = vmatprep.subr.bf16.mxu1 %v2480_v34 }
 0x1b9   :  { %2333 = vmatprep.subr.bf16.mxu0 %v2332_v62 }
 0x1ba   :  { %2335 = vmatpush3.bf16.msra.mxu0 %v2334_v52 }
 0x1bb   :  { %2483 = vmatpush3.bf16.msra.mxu1 %v2482_v42  ;;  %2337 = vmatprep.subr.bf16.mxu0 %v2336_v59 }
 0x1bc   :  { %2485 = vmatprep.subr.bf16.mxu1 %v2484_v46 }
 0x1be   :  { %2339 = vmatpush3.bf16.msra.mxu0 %v2338_v2 }
 0x1bf   :  { %2487 = vmatpush3.bf16.msra.mxu1 %v2486_v18  ;;  %2341 = vmatprep.subr.bf16.mxu0 %v2340_v10  ;;  %v877_v10 = vld [vmem:[%s4212_s5 + $0x1a8] sm:$0xff] }
 0x1c0   :  { %2489 = vmatprep.subr.bf16.mxu1 %v2488_v55  ;;  %v2348_v17 = vpack.c.bf16 %v877_v10, %v876_v8  ;;  %v911_v8 = vld [vmem:[%s4212_s5 + $0x2b8] sm:$0xff] }
 0x1c3   :  { %2491 = vmatpush3.bf16.msra.mxu1 %v2490_v0  ;;  %v858_v0 = vld [vmem:[%s4212_s5 + $0x110] sm:$0xff] }
 0x1c4   :  { %2493 = vmatprep.subr.bf16.mxu1 %v2492_v5  ;;  %v859_v5 = vld [vmem:[%s4212_s5 + $0x118] sm:$0xff] }
 0x1c5   :  { %v2346_v13 = vpack.c.bf16 %v859_v5, %v858_v0  ;;  %v908_v0 = vld [vmem:[%s4212_s5 + $0x2a0] sm:$0xff] }
 0x1c6   :  { %v892_v5 = vld [vmem:[%s4212_s5 + $0x220] sm:$0xff] }
 0x1c7   :  { %2495 = vmatpush3.bf16.msra.mxu1 %v2494_v15 }
 0x1c8   :  { %2497 = vmatprep.subr.bf16.mxu1 %v2496_v19  ;;  %v860_v19 = vld [vmem:[%s4212_s5 + $0x120] sm:$0xff] }
 0x1cb   :  { %2499 = vmatpush3.bf16.msra.mxu1 %v2498_v22  ;;  %v878_v22 = vld [vmem:[%s4212_s5 + $0x1b0] sm:$0xff] }
 0x281   :  { %v729_v26 = vpop.f32.mrb[0].mxu1 }
 0x282   :  { %v2530_v27 = vadd.f32 %v729_v26, %v490_v24  ;;  %v731_v28 = vpop.f32.mrb[1].mxu1  ;;  %v2352_v26 = vpack.c.bf16 %v879_v23, %v878_v22  ;;  %v896_v22 = vld [vmem:[%s4212_s5 + $0x240] sm:$0xff]  ;;  %v897_v23 = vld [vmem:[%s4212_s5 + $0x248] sm:$0xff] }
 0x283   :  { %v2531_v29 = vadd.f32 %v731_v28, %v494_v25  ;;  %v863_v28 = vld [vmem:[%s4212_s5 + $0x138] sm:$0xff] }
 0x284   :  { %v752_v30 = vmin.f32 %v2530_v27, 0.0  ;;  %vm746_vm8 = vcmp.gt.f32.partialorder %v2530_v27, 0.0 }
 0x285   :  { %v753_v31 = vmin.f32 %v2531_v29, 0.0  ;;  %v735_v32 = vpop.f32.mrb[2].mxu1  ;;  %vm747_vm9 = vcmp.gt.f32.partialorder %v2531_v29, 0.0 }
 0x286   :  { %v758_v33 = vmul.f32 1.442695, %v752_v30  ;;  %v2532_v34 = vadd.f32 %v735_v32, %v490_v24  ;;  %v737_v35 = vpop.f32.mrb[3].mxu1  ;;  %v881_v30 = vld [vmem:[%s4212_s5 + $0x1c8] sm:$0xff] }
 0x287   :  { %v760_v36 = vmul.f32 1.442695, %v753_v31  ;;  %v2533_v37 = vadd.f32 %v737_v35, %v494_v25  ;;  %v882_v35 = vld [vmem:[%s4212_s5 + $0x1d0] sm:$0xff] }
 0x288   :  { %2573 = vpow2.f32 %v758_v33  ;;  %v754_v38 = vmin.f32 %v2532_v34, 0.0  ;;  %vm748_vm10 = vcmp.gt.f32.partialorder %v2532_v34, 0.0  ;;  %v864_v33 = vld [vmem:[%s4212_s5 + $0x140] sm:$0xff] }
 0x289   :  { %2575 = vpow2.f32 %v760_v36  ;;  %v755_v39 = vmin.f32 %v2533_v37, 0.0  ;;  %v741_v12 = vpop.f32.mrb[4].mxu1  ;;  %vm749_vm11 = vcmp.gt.f32.partialorder %v2533_v37, 0.0  ;;  %v883_v36 = vld [vmem:[%s4212_s5 + $0x1d8] sm:$0xff] }
 0x28a   :  { %v762_v40 = vmul.f32 1.442695, %v754_v38  ;;  %v2534_v11 = vadd.f32 %v741_v12, %v490_v24  ;;  %v743_v14 = vpop.f32.mrb[5].mxu1  ;;  %v2360_v38 = vpack.c.bf16 %v883_v36, %v882_v35  ;;  %v867_v12 = vld [vmem:[%s4212_s5 + $0x158] sm:$0xff]  ;;  %v901_v35 = vld [vmem:[%s4212_s5 + $0x268] sm:$0xff]  ;;  %v918_v36 = vld [vmem:[%s4212_s5 + $0x2f0] sm:$0xff] }
 0x28b   :  { %v764_v41 = vmul.f32 1.442695, %v755_v39  ;;  %v2535_v42 = vadd.f32 %v743_v14, %v494_v25  ;;  %v2350_v25 = vpack.c.bf16 %v861_v20, %v860_v19  ;;  %v866_v39 = vld [vmem:[%s4212_s5 + $0x150] sm:$0xff]  ;;  %v913_v19 = vld [vmem:[%s4212_s5 + $0x2c8] sm:$0xff] }
 0x28c   :  { %2577 = vpow2.f32 %v762_v40  ;;  %v756_v43 = vmin.f32 %v2534_v11, 0.0  ;;  %v884_v40 = vld [vmem:[%s4212_s5 + $0x1e0] sm:$0xff]  ;;  %v885_v11 = vld [vmem:[%s4212_s5 + $0x1e8] sm:$0xff]  ;;  %v2362_v14 = vpack.c.bf16 %v867_v12, %v866_v39  ;;  %v902_v12 = vld [vmem:[%s4212_s5 + $0x270] sm:$0xff] }
 0x28d   :  { %2579 = vpow2.f32 %v764_v41  ;;  %v757_v44 = vmin.f32 %v2535_v42, 0.0  ;;  %v2364_v41 = vpack.c.bf16 %v885_v11, %v884_v40  ;;  %v868_v42 = vld [vmem:[%s4212_s5 + $0x160] sm:$0xff]  ;;  %v903_v40 = vld [vmem:[%s4212_s5 + $0x278] sm:$0xff] }
 0x28e   :  { %v766_v45 = vmul.f32 1.442695, %v756_v43  ;;  %v869_v43 = vld [vmem:[%s4212_s5 + $0x168] sm:$0xff]  ;;  %v936_v11 = vld [vmem:[%s4212_s5 + $0x380] sm:$0xff] }
 0x28f   :  { %v768_v46 = vmul.f32 1.442695, %v757_v44  ;;  %v886_v44 = vld [vmem:[%s4212_s5 + $0x1f0] sm:$0xff] }
 0x290   :  { %2581 = vpow2.f32 %v766_v45  ;;  %v887_v45 = vld [vmem:[%s4212_s5 + $0x1f8] sm:$0xff] }
 0x291   :  { %2583 = vpow2.f32 %v768_v46  ;;  %v2366_v46 = vpack.c.bf16 %v869_v43, %v868_v42  ;;  %v920_v43 = vld [vmem:[%s4212_s5 + $0x300] sm:$0xff] }
 0x292   :  { %v2574_v47 = vpop.eup %2573 }
 0x293   :  { %v2576_v48 = vpop.eup %2575  ;;  %v1765_v49 = vadd.f32 -1.0, %v2574_v47  ;;  %v2368_v47 = vpack.c.bf16 %v887_v45, %v886_v44  ;;  %v921_v44 = vld [vmem:[%s4212_s5 + $0x308] sm:$0xff] }
 0x294   :  { %v1766_v62 = vadd.f32 -1.0, %v2576_v48  ;;  %v870_v48 = vld [vmem:[%s4212_s5 + $0x170] sm:$0xff] }
 0x295   :  { %v776_v50 = vsel %vm746_vm8, %v2530_v27, %v1765_v49  ;;  %v862_v27 = vld [vmem:[%s4212_s5 + $0x130] sm:$0xff]  ;;  %v871_v49 = vld [vmem:[%s4212_s5 + $0x178] sm:$0xff]  ;;  %vm1736_vm8 = vcmask 113664  }
 0x296   :  { %v2578_v51 = vpop.eup %2577  ;;  %782 = vst [vmem:[#allocation3] sm:$0xff] %v776_v50  ;;  %v777_v1 = vsel %vm747_vm9, %v2531_v29, %v1766_v62  ;;  %v880_v29 = vld [vmem:[%s4212_s5 + $0x1c0] sm:$0xff]  ;;  %v2354_v31 = vpack.c.bf16 %v863_v28, %v862_v27  ;;  %v905_v50 = vld [vmem:[%s4212_s5 + $0x288] sm:$0xff]  ;;  %v898_v28 = vld [vmem:[%s4212_s5 + $0x250] sm:$0xff]  ;;  %vm1738_vm9 = vcmask 121856  }
 0x297   :  { %v2580_v18 = vpop.eup %2579  ;;  %783 = vst [vmem:[#allocation3 + $0x8] sm:$0xff] %v777_v1  ;;  %v1767_v52 = vadd.f32 -1.0, %v2578_v51  ;;  %v2356_v32 = vpack.c.bf16 %v881_v30, %v880_v29  ;;  %v904_v62 = vld [vmem:[%s4212_s5 + $0x280] sm:$0xff]  ;;  %v2370_v51 = vpack.c.bf16 %v871_v49, %v870_v48  ;;  %v899_v29 = vld [vmem:[%s4212_s5 + $0x258] sm:$0xff]  ;;  %v2406_v49 = vpack.c.bf16 %v921_v44, %v920_v43  ;;  %v973_v43 = vld [vmem:[%s4212_s5 + $0x4a8] sm:$0xff] }
 0x298   :  { %v1768_v53 = vadd.f32 -1.0, %v2580_v18  ;;  %v2372_v1 = vpack.c.bf16 %v905_v50, %v904_v62  ;;  %v888_v18 = vld [vmem:[%s4212_s5 + $0x200] sm:$0xff] }
 0x299   :  { %v778_v54 = vsel %vm748_vm10, %v2532_v34, %v1767_v52  ;;  %v865_v34 = vld [vmem:[%s4212_s5 + $0x148] sm:$0xff]  ;;  %v916_v30 = vld [vmem:[%s4212_s5 + $0x2e0] sm:$0xff]  ;;  %vm1741_vm10 = vcmask 123904  }
 0x29a   :  { %v2582_v55 = vpop.eup %2581  ;;  %784 = vst [vmem:[#allocation3 + $0x10] sm:$0xff] %v778_v54  ;;  %v779_v56 = vsel %vm749_vm11, %v2533_v37, %v1768_v53  ;;  %v2358_v37 = vpack.c.bf16 %v865_v34, %v864_v33  ;;  %v889_v52 = vld [vmem:[%s4212_s5 + $0x208] sm:$0xff]  ;;  %v906_v54 = vld [vmem:[%s4212_s5 + $0x290] sm:$0xff]  ;;  %v900_v34 = vld [vmem:[%s4212_s5 + $0x260] sm:$0xff]  ;;  %vm1746_vm11 = vcmask 386176  }
 0x29b   :  { %v2584_v59 = vpop.eup %2583  ;;  %785 = vst [vmem:[#allocation3 + $0x18] sm:$0xff] %v779_v56  ;;  %v907_v55 = vld [vmem:[%s4212_s5 + $0x298] sm:$0xff]  ;;  %v2374_v57 = vpack.c.bf16 %v889_v52, %v888_v18  ;;  %v940_v52 = vld [vmem:[%s4212_s5 + $0x3a0] sm:$0xff] }
 0x29c   :  { %v2376_v59 = vpack.c.bf16 %v907_v55, %v906_v54 }
 0x29d   :  { %v788_v6 = vld [vmem:[#allocation3] sm:$0x3]  ;;  %v790_v53 = vld [vmem:[#allocation3] sm:$0xc]  ;;  %v792_v45 = vld [vmem:[#allocation3] sm:$0x30] }
 0x29e   :  { %v789_v2 = vld [vmem:[#allocation3 + $0x8] sm:$0x3]  ;;  %v791_v3 = vld [vmem:[#allocation3 + $0x8] sm:$0xc]  ;;  %v793_v56 = vld [vmem:[#allocation3 + $0x8] sm:$0x30] }
 0x29f   :  { %1081 = vmatprep.mubr.f32.mxu0 %v789_v2  ;;  %v803_v7 = vrot.slane %v791_v3, 2  ;;  %v802_v58 = vrot.slane %v790_v53, 2  ;;  %v909_v2 = vld [vmem:[%s4212_s5 + $0x2a8] sm:$0xff]  ;;  %v2378_v3 = vpack.c.bf16 %v891_v61, %v890_v60  ;;  %v795_v48 = vld [vmem:[#allocation3 + $0x8] sm:$0xc0]  ;;  %v808_v62 = vrot.slane %v792_v45, 4 }
 0x2a0   :  { %1082 = vmatmul.mubr.f32.vlgmr.msra.gmra.mrb[6].mxu0 %v788_v6  ;;  %v893_v6 = vld [vmem:[%s4212_s5 + $0x228] sm:$0xff]  ;;  %v815_v18 = vrot.slane %v795_v48, 6 }
 0x2a1   :  { %2343 = vmatpush3.bf16.msra.mxu0 %v2342_v63  ;;  %1151 = vmatprep.mubr.f32.mxu0 %v803_v7  ;;  %v798_v15 = vld [vmem:[#allocation3 + $0x10] sm:$0xc]  ;;  %v809_v63 = vrot.slane %v793_v56, 4  ;;  %v910_v7 = vld [vmem:[%s4212_s5 + $0x2b0] sm:$0xff]  ;;  %v2382_v10 = vpack.c.bf16 %v893_v6, %v892_v5  ;;  %v941_v53 = vld [vmem:[%s4212_s5 + $0x3a8] sm:$0xff] }
 0x2a2   :  { %2345 = vmatprep.subr.bf16.mxu0 %v2344_v4  ;;  %v799_v16 = vld [vmem:[#allocation3 + $0x18] sm:$0xc]  ;;  %v820_v24 = vrot.slane %v798_v15, 2  ;;  %v2380_v4 = vpack.c.bf16 %v909_v2, %v908_v0  ;;  %v894_v15 = vld [vmem:[%s4212_s5 + $0x230] sm:$0xff]  ;;  %v2412_v55 = vpack.c.bf16 %v941_v53, %v940_v52  ;;  %v924_v56 = vld [vmem:[%s4212_s5 + $0x320] sm:$0xff] }
 0x2a3   :  { %v821_v21 = vrot.slane %v799_v16, 2  ;;  %v895_v16 = vld [vmem:[%s4212_s5 + $0x238] sm:$0xff]  ;;  %v944_v2 = vld [vmem:[%s4212_s5 + $0x3c0] sm:$0xff]  ;;  %v797_v44 = vld [vmem:[#allocation3 + $0x18] sm:$0x3] }
 0x2a4   :  { %v2386_v20 = vpack.c.bf16 %v895_v16, %v894_v15  ;;  %v927_v0 = vld [vmem:[%s4212_s5 + $0x338] sm:$0xff]  ;;  %v928_v6 = vld [vmem:[%s4212_s5 + $0x340] sm:$0xff]  ;;  %v930_v16 = vld [vmem:[%s4212_s5 + $0x350] sm:$0xff] }
 0x2a5   :  { %2347 = vmatpush3.bf16.msra.mxu0 %v2346_v13  ;;  %1431 = vmatprep.mubr.f32.mxu1 %v821_v21  ;;  %v2384_v13 = vpack.c.bf16 %v911_v8, %v910_v7  ;;  %v929_v7 = vld [vmem:[%s4212_s5 + $0x348] sm:$0xff]  ;;  %v946_v8 = vld [vmem:[%s4212_s5 + $0x3d0] sm:$0xff]  ;;  %v976_v52 = vld [vmem:[%s4212_s5 + $0x4c0] sm:$0xff] }
 0x2a6   :  { %1432 = vmatmul.mubr.f32.vlgmr.msra.gmra.mrb[6].mxu1 %v820_v24  ;;  %2349 = vmatprep.subr.bf16.mxu0 %v2348_v17  ;;  %v912_v17 = vld [vmem:[%s4212_s5 + $0x2c0] sm:$0xff]  ;;  %v914_v24 = vld [vmem:[%s4212_s5 + $0x2d0] sm:$0xff]  ;;  %v957_v48 = vld [vmem:[%s4212_s5 + $0x428] sm:$0xff] }
 0x2a7   :  { %v2388_v21 = vpack.c.bf16 %v913_v19, %v912_v17  ;;  %v931_v17 = vld [vmem:[%s4212_s5 + $0x358] sm:$0xff]  ;;  %v948_v19 = vld [vmem:[%s4212_s5 + $0x3e0] sm:$0xff]  ;;  %v977_v53 = vld [vmem:[%s4212_s5 + $0x4c8] sm:$0xff]  ;;  %2049 = vmatprep.mubr.msk.f32.mxu1 %vm2611_vm12, %v2607_v9 }
 0x2a9   :  { %2351 = vmatpush3.bf16.msra.mxu0 %v2350_v25  ;;  %v915_v25 = vld [vmem:[%s4212_s5 + $0x2d8] sm:$0xff] }
 0x2aa   :  { %2353 = vmatprep.subr.bf16.mxu0 %v2352_v26  ;;  %v2390_v26 = vpack.c.bf16 %v897_v23, %v896_v22  ;;  %v2392_v27 = vpack.c.bf16 %v915_v25, %v914_v24  ;;  %v932_v23 = vld [vmem:[%s4212_s5 + $0x360] sm:$0xff]  ;;  %v933_v24 = vld [vmem:[%s4212_s5 + $0x368] sm:$0xff]  ;;  %v950_v25 = vld [vmem:[%s4212_s5 + $0x3f0] sm:$0xff] }
 0x2ad   :  { %2355 = vmatpush3.bf16.msra.mxu0 %v2354_v31  ;;  %v917_v31 = vld [vmem:[%s4212_s5 + $0x2e8] sm:$0xff] }
 0x2ae   :  { %2357 = vmatprep.subr.bf16.mxu0 %v2356_v32  ;;  %v2394_v32 = vpack.c.bf16 %v899_v29, %v898_v28  ;;  %v2396_v33 = vpack.c.bf16 %v917_v31, %v916_v30  ;;  %v934_v29 = vld [vmem:[%s4212_s5 + $0x370] sm:$0xff]  ;;  %v935_v30 = vld [vmem:[%s4212_s5 + $0x378] sm:$0xff]  ;;  %v968_v31 = vld [vmem:[%s4212_s5 + $0x480] sm:$0xff] }
 0x2b1   :  { %2359 = vmatpush3.bf16.msra.mxu0 %v2358_v37  ;;  %v919_v37 = vld [vmem:[%s4212_s5 + $0x2f8] sm:$0xff] }
 0x2b2   :  { %2361 = vmatprep.subr.bf16.mxu0 %v2360_v38  ;;  %v2398_v38 = vpack.c.bf16 %v901_v35, %v900_v34  ;;  %v2400_v39 = vpack.c.bf16 %v919_v37, %v918_v36  ;;  %v952_v35 = vld [vmem:[%s4212_s5 + $0x400] sm:$0xff]  ;;  %v953_v36 = vld [vmem:[%s4212_s5 + $0x408] sm:$0xff]  ;;  %v794_v37 = vld [vmem:[#allocation3] sm:$0xc0] }
 0x2b5   :  { %2363 = vmatpush3.bf16.msra.mxu0 %v2362_v14  ;;  %v937_v14 = vld [vmem:[%s4212_s5 + $0x388] sm:$0xff] }
 0x2b6   :  { %2365 = vmatprep.subr.bf16.mxu0 %v2364_v41  ;;  %v2402_v41 = vpack.c.bf16 %v903_v40, %v902_v12  ;;  %v2404_v42 = vpack.c.bf16 %v937_v14, %v936_v11  ;;  %v2438_v12 = vpack.c.bf16 %v953_v36, %v952_v35  ;;  %v814_v40 = vrot.slane %v794_v37, 6  ;;  %v954_v14 = vld [vmem:[%s4212_s5 + $0x410] sm:$0xff] }
 0x2b9   :  { %2367 = vmatpush3.bf16.msra.mxu0 %v2366_v46  ;;  %v938_v46 = vld [vmem:[%s4212_s5 + $0x390] sm:$0xff] }
 0x2ba   :  { %2369 = vmatprep.subr.bf16.mxu0 %v2368_v47  ;;  %v939_v47 = vld [vmem:[%s4212_s5 + $0x398] sm:$0xff] }
 0x2bb   :  { %v2408_v50 = vpack.c.bf16 %v939_v47, %v938_v46  ;;  %v956_v47 = vld [vmem:[%s4212_s5 + $0x420] sm:$0xff] }
 0x2bd   :  { %2371 = vmatpush3.bf16.msra.mxu0 %v2370_v51  ;;  %v922_v51 = vld [vmem:[%s4212_s5 + $0x310] sm:$0xff] }
 0x2be   :  { %2373 = vmatprep.subr.bf16.mxu0 %v2372_v1  ;;  %v923_v1 = vld [vmem:[%s4212_s5 + $0x318] sm:$0xff] }
 0x2bf   :  { %v2410_v54 = vpack.c.bf16 %v923_v1, %v922_v51  ;;  %v958_v1 = vld [vmem:[%s4212_s5 + $0x430] sm:$0xff] }
 0x2c0   :  { %1152 = vmatmul.mubr.f32.vlgmr.msra.gmra.mrb[8].mxu0 %v802_v58  ;;  %v942_v58 = vld [vmem:[%s4212_s5 + $0x3b0] sm:$0xff] }
 0x2c1   :  { %2375 = vmatpush3.bf16.msra.mxu0 %v2374_v57  ;;  %1221 = vmatprep.mubr.f32.mxu0 %v809_v63  ;;  %v925_v57 = vld [vmem:[%s4212_s5 + $0x328] sm:$0xff]  ;;  %v926_v63 = vld [vmem:[%s4212_s5 + $0x330] sm:$0xff] }
 0x2c2   :  { %2377 = vmatprep.subr.bf16.mxu0 %v2376_v59  ;;  %v943_v59 = vld [vmem:[%s4212_s5 + $0x3b8] sm:$0xff]  ;;  %v2414_v60 = vpack.c.bf16 %v925_v57, %v924_v56  ;;  %v960_v56 = vld [vmem:[%s4212_s5 + $0x440] sm:$0xff]  ;;  %v961_v57 = vld [vmem:[%s4212_s5 + $0x448] sm:$0xff] }
 0x2c3   :  { %v2416_v61 = vpack.c.bf16 %v943_v59, %v942_v58  ;;  %v978_v58 = vld [vmem:[%s4212_s5 + $0x4d0] sm:$0xff]  ;;  %v979_v59 = vld [vmem:[%s4212_s5 + $0x4d8] sm:$0xff] }
 0x2c5   :  { %2379 = vmatpush3.bf16.msra.mxu0 %v2378_v3  ;;  %v945_v3 = vld [vmem:[%s4212_s5 + $0x3c8] sm:$0xff] }
 0x2c6   :  { %2381 = vmatprep.subr.bf16.mxu0 %v2380_v4  ;;  %v2418_v4 = vpack.c.bf16 %v927_v0, %v926_v63  ;;  %v2420_v5 = vpack.c.bf16 %v945_v3, %v944_v2  ;;  %v962_v63 = vld [vmem:[%s4212_s5 + $0x450] sm:$0xff]  ;;  %v963_v0 = vld [vmem:[%s4212_s5 + $0x458] sm:$0xff]  ;;  %v980_v2 = vld [vmem:[%s4212_s5 + $0x4e0] sm:$0xff] }
 0x2c7   :  { %v981_v3 = vld [vmem:[%s4212_s5 + $0x4e8] sm:$0xff] }
 0x2c9   :  { %2383 = vmatpush3.bf16.msra.mxu0 %v2382_v10  ;;  %v947_v10 = vld [vmem:[%s4212_s5 + $0x3d8] sm:$0xff] }
 0x2ca   :  { %2385 = vmatprep.subr.bf16.mxu0 %v2384_v13  ;;  %v2422_v13 = vpack.c.bf16 %v929_v7, %v928_v6  ;;  %v2424_v15 = vpack.c.bf16 %v947_v10, %v946_v8  ;;  %v964_v6 = vld [vmem:[%s4212_s5 + $0x460] sm:$0xff]  ;;  %v965_v7 = vld [vmem:[%s4212_s5 + $0x468] sm:$0xff]  ;;  %v982_v8 = vld [vmem:[%s4212_s5 + $0x4f0] sm:$0xff] }
 0x2cb   :  { %v983_v10 = vld [vmem:[%s4212_s5 + $0x4f8] sm:$0xff] }
 0x2cd   :  { %2387 = vmatpush3.bf16.msra.mxu0 %v2386_v20  ;;  %v949_v20 = vld [vmem:[%s4212_s5 + $0x3e8] sm:$0xff] }
 0x2ce   :  { %2389 = vmatprep.subr.bf16.mxu0 %v2388_v21  ;;  %v2426_v21 = vpack.c.bf16 %v931_v17, %v930_v16  ;;  %v2428_v22 = vpack.c.bf16 %v949_v20, %v948_v19  ;;  %v966_v16 = vld [vmem:[%s4212_s5 + $0x470] sm:$0xff]  ;;  %v967_v17 = vld [vmem:[%s4212_s5 + $0x478] sm:$0xff]  ;;  %v1443_v19 = vld [vmem:[%s4213_s2] sm:$0x3]  ;;  %s2619_s2 = smov 48  }
 0x2cf   :  { %v2466_v20 = vpack.c.bf16 %v967_v17, %v966_v16  ;;  %1446 = vrot.lane.b32.xlu0 %v1443_v19, %s2608_s16  ;;  %v1475_v19 = vld [vmem:[%s4211_s7 + $0x3] ss:$0 sm:$0xff] }
 0x2d1   :  { %2391 = vmatpush3.bf16.msra.mxu0 %v2390_v26  ;;  %v951_v26 = vld [vmem:[%s4212_s5 + $0x3f8] sm:$0xff] }
 0x2d2   :  { %2393 = vmatprep.subr.bf16.mxu0 %v2392_v27  ;;  %v2430_v27 = vpack.c.bf16 %v933_v24, %v932_v23  ;;  %v2432_v28 = vpack.c.bf16 %v951_v26, %v950_v25  ;;  %v2610_v23 = vmov 0.0|0.0   ;;  %v1459_v24 = vld [vmem:[%s4215_s6] sm:$0xff]  ;;  %v1460_v25 = vld [vmem:[%s4215_s6 + $0x8] sm:$0xff] }
 0x2d3   :  { %2524 = vmatprep.subr.bf16.mxu1 %v2610_v23  ;;  %v2501_v26 = vpack.c.bf16 %v1460_v25, %v1459_v24  ;;  %v1553_v25 = vld [vmem:[%s4216_s3] sm:$0x3] }
 0x2d5   :  { %2395 = vmatpush3.bf16.msra.mxu0 %v2394_v32  ;;  %v969_v32 = vld [vmem:[%s4212_s5 + $0x488] sm:$0xff] }
 0x2d6   :  { %2397 = vmatprep.subr.bf16.mxu0 %v2396_v33  ;;  %v2434_v33 = vpack.c.bf16 %v935_v30, %v934_v29  ;;  %v2436_v34 = vpack.c.bf16 %v969_v32, %v968_v31  ;;  %v1462_v29 = vld [vmem:[%s4215_s6 + $0x18] sm:$0xff] }
 0x2d9   :  { %2399 = vmatpush3.bf16.msra.mxu0 %v2398_v38  ;;  %v970_v38 = vld [vmem:[%s4212_s5 + $0x490] sm:$0xff] }
 0x2da   :  { %2401 = vmatprep.subr.bf16.mxu0 %v2400_v39  ;;  %v971_v39 = vld [vmem:[%s4212_s5 + $0x498] sm:$0xff] }
 0x2db   :  { %v2440_v11 = vpack.c.bf16 %v971_v39, %v970_v38  ;;  %v1465_v39 = vld [vmem:[%s4215_s6 + $0x30] sm:$0xff] }
 0x2dd   :  { %2403 = vmatpush3.bf16.msra.mxu0 %v2402_v41  ;;  %v955_v41 = vld [vmem:[%s4212_s5 + $0x418] sm:$0xff] }
 0x2de   :  { %2405 = vmatprep.subr.bf16.mxu0 %v2404_v42  ;;  %v972_v42 = vld [vmem:[%s4212_s5 + $0x4a0] sm:$0xff]  ;;  %v2442_v45 = vpack.c.bf16 %v955_v41, %v954_v14  ;;  %v1468_v14 = vld [vmem:[%s4215_s6 + $0x48] sm:$0xff]  ;;  %v1469_v41 = vld [vmem:[%s4215_s6 + $0x50] sm:$0xff] }
 0x2df   :  { %v2444_v46 = vpack.c.bf16 %v973_v43, %v972_v42  ;;  %v1470_v43 = vld [vmem:[%s4215_s6 + $0x58] sm:$0xff] }
 0x2e0   :  { %1222 = vmatmul.mubr.f32.vlgmr.msra.gmra.mrb[10].mxu0 %v808_v62  ;;  %v975_v62 = vld [vmem:[%s4212_s5 + $0x4b8] sm:$0xff] }
 0x2e1   :  { %2407 = vmatpush3.bf16.msra.mxu0 %v2406_v49  ;;  %1291 = vmatprep.mubr.f32.mxu0 %v815_v18  ;;  %v974_v49 = vld [vmem:[%s4212_s5 + $0x4b0] sm:$0xff]  ;;  %v959_v18 = vld [vmem:[%s4212_s5 + $0x438] sm:$0xff] }
 0x2e2   :  { %2409 = vmatprep.subr.bf16.mxu0 %v2408_v50  ;;  %v2446_v50 = vpack.c.bf16 %v957_v48, %v956_v47  ;;  %v2448_v51 = vpack.c.bf16 %v975_v62, %v974_v49  ;;  %v1473_v48 = vld [vmem:[%s4215_s6 + $0x70] sm:$0xff]  ;;  %v1474_v49 = vld [vmem:[%s4215_s6 + $0x78] sm:$0xff] }
 0x2e3   :  { %v2522_v62 = vpack.c.bf16 %v1474_v49, %v1473_v48 }
 0x2e5   :  { %2411 = vmatpush3.bf16.msra.mxu0 %v2410_v54  ;;  %v2450_v54 = vpack.c.bf16 %v959_v18, %v958_v1 }
 0x2e6   :  { %2413 = vmatprep.subr.bf16.mxu0 %v2412_v55  ;;  %v2452_v55 = vpack.c.bf16 %v977_v53, %v976_v52 }
 0x2e9   :  { %2415 = vmatpush3.bf16.msra.mxu0 %v2414_v60  ;;  %v2454_v60 = vpack.c.bf16 %v961_v57, %v960_v56 }
 0x2ea   :  { %2417 = vmatprep.subr.bf16.mxu0 %v2416_v61  ;;  %v2456_v61 = vpack.c.bf16 %v979_v59, %v978_v58 }
 0x2ed   :  { %2419 = vmatpush3.bf16.msra.mxu0 %v2418_v4  ;;  %v2458_v4 = vpack.c.bf16 %v963_v0, %v962_v63 }
 0x2ee   :  { %2421 = vmatprep.subr.bf16.mxu0 %v2420_v5  ;;  %v2460_v5 = vpack.c.bf16 %v981_v3, %v980_v2 }
 0x2f1   :  { %2423 = vmatpush3.bf16.msra.mxu0 %v2422_v13  ;;  %v2462_v13 = vpack.c.bf16 %v965_v7, %v964_v6 }
 0x2f2   :  { %2425 = vmatprep.subr.bf16.mxu0 %v2424_v15  ;;  %v2464_v15 = vpack.c.bf16 %v983_v10, %v982_v8 }
 0x2f5   :  { %2427 = vmatpush3.bf16.msra.mxu0 %v2426_v21  ;;  %v1444_v21 = vld [vmem:[%s4214_s1] sm:$0x3] }
 0x2f6   :  { %2429 = vmatprep.subr.bf16.mxu0 %v2428_v22  ;;  %1450 = vrot.lane.b32.xlu0 %v1444_v21, %s2609_s19  ;;  %v796_v22 = vld [vmem:[#allocation3 + $0x10] sm:$0x3] }
 0x2f9   :  { %2431 = vmatpush3.bf16.msra.mxu0 %v2430_v27 }
 0x2fa   :  { %2433 = vmatprep.subr.bf16.mxu0 %v2432_v28  ;;  %v1461_v28 = vld [vmem:[%s4215_s6 + $0x10] sm:$0xff] }
 0x2fb   :  { %v2504_v31 = vpack.c.bf16 %v1462_v29, %v1461_v28 }
 0x2fd   :  { %2435 = vmatpush3.bf16.msra.mxu0 %v2434_v33  ;;  %v1463_v33 = vld [vmem:[%s4215_s6 + $0x20] sm:$0xff] }
 0x2fe   :  { %2437 = vmatprep.subr.bf16.mxu0 %v2436_v34  ;;  %v1464_v34 = vld [vmem:[%s4215_s6 + $0x28] sm:$0xff] }
 0x2ff   :  { %v2507_v35 = vpack.c.bf16 %v1464_v34, %v1463_v33 }
 0x300   :  { %1292 = vmatmul.mubr.f32.vlgmr.msra.gmra.mrb[12].mxu0 %v814_v40 }
 0x301   :  { %2439 = vmatpush3.bf16.msra.mxu0 %v2438_v12  ;;  %1361 = vmatprep.mubr.f32.mxu0 %v797_v44  ;;  %v1466_v12 = vld [vmem:[%s4215_s6 + $0x38] sm:$0xff]  ;;  %v2516_v44 = vpack.c.bf16 %v1470_v43, %v1469_v41 }
 0x302   :  { %2441 = vmatprep.subr.bf16.mxu0 %v2440_v11  ;;  %v2510_v40 = vpack.c.bf16 %v1466_v12, %v1465_v39  ;;  %v1467_v11 = vld [vmem:[%s4215_s6 + $0x40] sm:$0xff]  ;;  %v1577_v39 = vld [vmem:[%s4215_s6 + $0x90] sm:$0xff] }
 0x303   :  { %v2513_v42 = vpack.c.bf16 %v1468_v14, %v1467_v11 }
 0x305   :  { %2443 = vmatpush3.bf16.msra.mxu0 %v2442_v45  ;;  %v1471_v45 = vld [vmem:[%s4215_s6 + $0x60] sm:$0xff] }
 0x306   :  { %2445 = vmatprep.subr.bf16.mxu0 %v2444_v46  ;;  %v1472_v46 = vld [vmem:[%s4215_s6 + $0x68] sm:$0xff] }
 0x307   :  { %v2519_v47 = vpack.c.bf16 %v1472_v46, %v1471_v45 }
 0x309   :  { %2447 = vmatpush3.bf16.msra.mxu0 %v2446_v50  ;;  %v1016_v50 = vld [vmem:[%s4211_s7 + $0x2] ss:$0 sm:$0xff] }
 0x30a   :  { %2449 = vmatprep.subr.bf16.mxu0 %v2448_v51 }
 0x30d   :  { %2451 = vmatpush3.bf16.msra.mxu0 %v2450_v54 }
 0x30e   :  { %2453 = vmatprep.subr.bf16.mxu0 %v2452_v55 }
 0x311   :  { %2455 = vmatpush3.bf16.msra.mxu0 %v2454_v60 }
 0x312   :  { %2457 = vmatprep.subr.bf16.mxu0 %v2456_v61 }
 0x315   :  { %2459 = vmatpush3.bf16.msra.mxu0 %v2458_v4 }
 0x316   :  { %2461 = vmatprep.subr.bf16.mxu0 %v2460_v5 }
 0x319   :  { %2463 = vmatpush3.bf16.msra.mxu0 %v2462_v13 }
 0x31a   :  { %2465 = vmatprep.subr.bf16.mxu0 %v2464_v15 }
 0x31d   :  { %2467 = vmatpush3.bf16.msra.mxu0 %v2466_v20 }
 0x31e   :  { %2500 = vmatprep.subr.bf16.mxu0 %v2610_v23 }
 0x320   :  { %1362 = vmatmul.mubr.f32.vlgmr.msra.gmra.mrb[14].mxu0 %v796_v22 }
 0x321   :  { %2502 = vmatpush3.bf16.msra.mxu0 %v2501_v26  ;;  %2038 = vmatprep.mubr.msk.f32.mxu0 %vm2611_vm12, %v2607_v9  ;;  %vm1752_vm12 = vcmask 648576  }
 0x322   :  { %2503 = vmatprep.subr.bf16.mxu0 %v2610_v23 }
 0x325   :  { %2505 = vmatpush3.bf16.msra.mxu0 %v2504_v31 }
 0x326   :  { %2506 = vmatprep.subr.bf16.mxu0 %v2610_v23 }
 0x329   :  { %2508 = vmatpush3.bf16.msra.mxu0 %v2507_v35 }
 0x32a   :  { %2509 = vmatprep.subr.bf16.mxu0 %v2610_v23 }
 0x32d   :  { %2511 = vmatpush3.bf16.msra.mxu0 %v2510_v40  ;;  %v1578_v40 = vld [vmem:[%s4215_s6 + $0x98] sm:$0xff] }
 0x32e   :  { %2512 = vmatprep.subr.bf16.mxu0 %v2610_v23  ;;  %v2528_v11 = vpack.c.bf16 %v1578_v40, %v1577_v39 }
 0x331   :  { %2514 = vmatpush3.bf16.msra.mxu0 %v2513_v42 }
 0x332   :  { %2515 = vmatprep.subr.bf16.mxu0 %v2610_v23 }
 0x335   :  { %2517 = vmatpush3.bf16.msra.mxu0 %v2516_v44  ;;  %v1579_v44 = vld [vmem:[%s4211_s7 + $0x4] ss:$0 sm:$0xff]  ;;  %s2613_s7 = smov 3  }
 0x336   :  { %2518 = vmatprep.subr.bf16.mxu0 %v2610_v23 }
 0x339   :  { %2520 = vmatpush3.bf16.msra.mxu0 %v2519_v47 }
 0x33a   :  { %2521 = vmatprep.subr.bf16.mxu0 %v2610_v23 }
 0x33d   :  { %2523 = vmatpush3.bf16.msra.mxu0 %v2522_v62 }
 0x341   :  { %v1447_v7 = vpop.permute.xlu0 %1446 }
 0x368   :  { %v1451_v13 = vpop.permute.xlu0 %1450 }
 0x373   :  { %v1806_v27 = vpop.f32.mrb[6].mxu0 }
 0x374   :  { %v1807_v30 = vpop.f32.mrb[7].mxu0 }
 0x375   :  { %v1808_v32 = vadd.f32 %v1807_v30, %v1806_v27 }
 0x377   :  { %v1084_v18 = vadd.f32 %v1808_v32, %v1016_v50 }
 0x379   :  { %v1981_v36 = vpop.f32.mrb[6].mxu1 }
 0x37a   :  { %v1982_v37 = vpop.f32.mrb[7].mxu1 }
 0x37b   :  { %v1983_v38 = vadd.f32 %v1982_v37, %v1981_v36  ;;  %v1575_v37 = vld [vmem:[%s4215_s6 + $0x80] sm:$0xff] }
 0x393   :  { %v1841_v51 = vpop.f32.mrb[8].mxu0 }
 0x394   :  { %v1842_v1 = vpop.f32.mrb[9].mxu0 }
 0x395   :  { %v1843_v52 = vadd.f32 %v1842_v1, %v1841_v51 }
 0x397   :  { %v1154_v53 = vadd.f32 %v1843_v52, %v1084_v18 }
 0x3b3   :  { %v1876_v54 = vpop.f32.mrb[10].mxu0 }
 0x3b4   :  { %v1877_v55 = vpop.f32.mrb[11].mxu0 }
 0x3b5   :  { %v1878_v56 = vadd.f32 %v1877_v55, %v1876_v54 }
 0x3b7   :  { %v1224_v57 = vadd.f32 %v1878_v56, %v1154_v53 }
 0x3d3   :  { %v1911_v58 = vpop.f32.mrb[12].mxu0 }
 0x3d4   :  { %v1912_v59 = vpop.f32.mrb[13].mxu0 }
 0x3d5   :  { %v1913_v60 = vadd.f32 %v1912_v59, %v1911_v58 }
 0x3d7   :  { %v1294_v61 = vadd.f32 %v1913_v60, %v1224_v57 }
 0x3f3   :  { %v1946_v63 = vpop.f32.mrb[14].mxu0 }
 0x3f4   :  { %v1947_v0 = vpop.f32.mrb[15].mxu0 }
 0x3f5   :  { %v1948_v2 = vadd.f32 %v1947_v0, %v1946_v63 }
 0x3f7   :  { %v1364_v3 = vadd.f32 %v1948_v2, %v1294_v61 }
 0x3f9   :  { %v1434_v4 = vadd.f32 %v1983_v38, %v1364_v3  ;;  %v1576_v38 = vld [vmem:[%s4215_s6 + $0x88] sm:$0xff]  ;;  %s2612_s6 = smov 122  }
 0x3fa   :  { %v2525_v12 = vpack.c.bf16 %v1576_v38, %v1575_v37 }
 0x3fb   :  { %v1438_v5 = vmin.f32 %v1434_v4, 0.0  ;;  %vm1437_vm14 = vcmp.gt.f32.partialorder %v1434_v4, 0.0 }
 0x3fc   :  { %2526 = vmatpush3.bf16.msra.mxu1 %v2525_v12 }
 0x3fd   :  { %v1439_v6 = vmul.f32 1.442695, %v1438_v5  ;;  %2527 = vmatprep.subr.bf16.mxu1 %v2610_v23 }
 0x3ff   :  { %2585 = vpow2.f32 %v1439_v6 }
 0x400   :  { %2529 = vmatpush3.bf16.msra.mxu1 %v2528_v11 }
 0x409   :  { %v2586_v8 = vpop.eup %2585 }
 0x40a   :  { %v1771_v10 = vadd.f32 -1.0, %v2586_v8 }
 0x40c   :  { %v1442_v15 = vsel %vm1437_vm14, %v1434_v4, %v1771_v10 }
 0x40d   :  { %v1454_v16 = vsel %vm1453_vm13, %v1442_v15, %v1447_v7 }
 0x40e   :  { %v1456_v17 = vsel %vm1455_vm15, %v1454_v16, %v1451_v13 }
 0x40f   :  { %2039 = vmatmul.mubr.msk.f32.vlgmr.msra.gmra.mrb[16].mxu0 %vm1457_vm0, %v1456_v17 }
 0x4e2   :  { %v1542_v20 = vpop.f32.mrb[16].mxu0 }
 0x4e3   :  { %v1543_v21 = vadd.f32 %v1542_v20, %v1475_v19  ;;  %v2040_v22 = vpop.f32.mrb[17].mxu0 }
 0x4e5   :  { %2587 = vtanh.f32 %v1543_v21  ;;  %v1546_v26 = vsub.f32 0.0, %v1543_v21 }
 0x4e7   :  { %v1547_v27 = vmul.f32 1.442695, %v1546_v26 }
 0x4e9   :  { %2589 = vpow2.f32 %v1547_v27 }
 0x4ef   :  { %v2588_v24 = vpop.eup %2587 }
 0x4f0   :  { %1560 = vrot.lane.b32.xlu1 %v2588_v24, %s2609_s19 }
 0x4f3   :  { %v2590_v28 = vpop.eup %2589 }
 0x4f4   :  { %1555 = vrot.lane.b32.xlu1 %v1553_v25, %s2608_s16  ;;  %v1549_v29 = vadd.f32 1.0, %v2590_v28 }
 0x4f6   :  { %2591 = vrcp.f32 %v1549_v29 }
 0x500   :  { %v2592_v30 = vpop.eup %2591 }
 0x562   :  { %v1561_v31 = vpop.permute.xlu1 %1560 }
 0x563   :  { %v1563_v32 = vmul.f32 %v2592_v30, %v1561_v31 }
 0x565   :  { %1565 = vrot.lane.b32.xlu0 %v1563_v32, %s2608_s16 }
 0x566   :  { %v1556_v33 = vpop.permute.xlu1 %1555 }
 0x567   :  { %v1558_v34 = vmul.f32 %v2592_v30, %v1556_v33 }
 0x5d7   :  { %v1566_v35 = vpop.permute.xlu0 %1565 }
 0x5d8   :  { %v4153_v36 = vadd.f32 %v1566_v35, %v1558_v34 }
 0x5da   :  { %2593 = vtanh.f32 %v4153_v36 }
 0x5e4   :  { %v2594_v14 = vpop.eup %2593 }
 0x5e5   :  { %1571 = vrot.lane.b32.xlu1 %v2594_v14, %s2609_s19  ;;  %s2615_s19 = smov 1  }
 0x657   :  { %v1572_v41 = vpop.permute.xlu1 %1571 }
 0x658   :  { %v4170_v42 = vmul.f32 %v2592_v30, %v1572_v41 }
 0x65a   :  { %1581 = vrot.lane.b32.xlu0 %v4170_v42, %s2608_s16  ;;  %s2614_s16 = smov 125  }
 0x6cc   :  { %v1582_v43 = vpop.permute.xlu0 %1581 }
 0x6cd   :  { %2050 = vmatmul.mubr.msk.f32.vlgmr.msra.gmra.mrb[8].mxu1 %vm1453_vm13, %v1582_v43 }
 0x7a0   :  { %v1651_v45 = vpop.f32.mrb[8].mxu1 }
 0x7a1   :  { %v4178_v23 = vadd.f32 %v1651_v45, %v1579_v44  ;;  %v2051_v46 = vpop.f32.mrb[9].mxu1 }
 0x7a3   :  { %v1681_v47 = vsel %vm1680_vm1, %v4178_v23, -inf  ;;  %v1656_v48 = vsel %vm1655_vm2, %v4178_v23, -inf  ;;  %v1709_v61 = vsub.f32 0.0, %v4178_v23 }
 0x7a4   :  { %1682 = vmax.xlane.f32.xlu1 %v1681_v47  ;;  %1657 = vmax.xlane.f32.xlu0 %v1656_v48 }
 0x7a5   :  { %v1710_v63 = vmul.f32 1.442695, %v1709_v61 }
 0x831   :  { %v1683_v49 = vpop.xlane.xlu1 %1682  ;;  %v1658_v62 = vpop.xlane.xlu0 %1657 }
 0x832   :  { %v1684_v50 = vsub.f32 %v4178_v23, %v1683_v49  ;;  %v1659_v51 = vsub.f32 %v4178_v23, %v1658_v62 }
 0x834   :  { %v1685_v1 = vmul.f32 1.442695, %v1684_v50  ;;  %v1660_v18 = vmul.f32 1.442695, %v1659_v51 }
 0x836   :  { %2595 = vpow2.f32 %v1685_v1 }
 0x837   :  { %2597 = vpow2.f32 %v1660_v18 }
 0x840   :  { %v2596_v52 = vpop.eup %2595 }
 0x841   :  { %v2598_v53 = vpop.eup %2597  ;;  %1688 = vrot.lane.b32.xlu0 %v2596_v52, %s2612_s6 }
 0x842   :  { %v1662_v54 = vsel %vm1655_vm2, %v2598_v53, 0.0 }
 0x843   :  { %1663 = vadd.xlane.f32.xlu1 %v1662_v54 }
 0x8b3   :  { %v1689_v55 = vpop.permute.xlu0 %1688 }
 0x8b4   :  { %v1691_v56 = vsel %vm1655_vm2, %v1689_v55, 0.0 }
 0x8b5   :  { %1692 = vadd.xlane.f32.xlu1 %v1691_v56 }
 0x8d0   :  { %v1664_v57 = vpop.xlane.xlu1 %1663 }
 0x8d1   :  { %2599 = vrcp.f32 %v1664_v57 }
 0x8d2   :  { %2601 = vpow2.f32 %v1710_v63 }
 0x8db   :  { %v2600_v58 = vpop.eup %2599 }
 0x8dc   :  { %v1666_v59 = vmul.f32 %v2600_v58, %v2598_v53  ;;  %v2602_v2 = vpop.eup %2601 }
 0x8dd   :  { %v1712_v5 = vadd.f32 1.0, %v2602_v2 }
 0x8de   :  { %v1667_v60 = vmin.f32 %v1666_v59, 1.0 }
 0x8e0   :  { %1669 = vrot.lane.b32.xlu1 %v1667_v60, %s2613_s7  ;;  %v1727_v25 = vsel %vm1726_vm3, %v1667_v60, %v4178_v23 }
 0x942   :  { %v1693_v0 = vpop.xlane.xlu1 %1692 }
 0x943   :  { %2603 = vrcp.f32 %v1693_v0 }
 0x944   :  { %2605 = vrcp.f32 %v1712_v5 }
 0x94d   :  { %v2604_v3 = vpop.eup %2603 }
 0x94e   :  { %v1695_v4 = vmul.f32 %v2604_v3, %v2596_v52  ;;  %v2606_v10 = vpop.eup %2605 }
 0x950   :  { %v1696_v6 = vmin.f32 %v1695_v4, 1.0 }
 0x952   :  { %v1670_v7 = vpop.permute.xlu1 %1669  ;;  %1698 = vrot.lane.b32.xlu0 %v1696_v6, %s2613_s7 }
 0x953   :  { %v1672_v8 = vmul.f32 %v1670_v7, %v4178_v23 }
 0x956   :  { %1674 = vrot.lane.b32.xlu0 %v1672_v8, %s2614_s16 }
 0x95a   :  { %1715 = vrot.lane.b32.xlu0 %v1696_v6, %s2615_s19 }
 0x95e   :  { %1723 = vrot.lane.b32.xlu0 %v2606_v10, %s2616_s15 }
 0x9c4   :  { %v1699_v13 = vpop.permute.xlu0 %1698 }
 0x9c5   :  { %v1701_v15 = vmul.f32 %v1699_v13, %v4178_v23 }
 0x9c7   :  { %1703 = vrot.lane.b32.xlu1 %v1701_v15, %s2617_s17 }
 0x9c8   :  { %v1675_v16 = vpop.permute.xlu0 %1674 }
 0x9c9   :  { %v1677_v17 = vsel %vm1655_vm2, %v1675_v16, 0.0 }
 0x9ca   :  { %1678 = vadd.xlane.f32.xlu0 %v1677_v17 }
 0x9cb   :  { %1719 = vrot.lane.b32.xlu1 %v4178_v23, %s2615_s19 }
 0x9cc   :  { %v1716_v21 = vpop.permute.xlu0 %1715 }
 0x9d0   :  { %v1724_v22 = vpop.permute.xlu0 %1723 }
 0x9e0   :  { %1749 = vrot.lane.b32.xlu0 %v4153_v36, %s2618_s18 }
 0xa39   :  { %v1704_v19 = vpop.permute.xlu1 %1703 }
 0xa3a   :  { %v1706_v20 = vsel %vm1655_vm2, %v1704_v19, 0.0 }
 0xa3b   :  { %1707 = vadd.xlane.f32.xlu1 %v1706_v20 }
 0xa3d   :  { %v1720_v27 = vpop.permute.xlu1 %1719 }
 0xa4c   :  { %1743 = vrot.lane.b32.xlu1 %v4170_v42, %s2619_s2 }
 0xa57   :  { %v1679_v24 = vpop.xlane.xlu0 %1678 }
 0xa58   :  { %v1729_v26 = vsel %vm1728_vm4, %v1727_v25, %v1679_v24 }
 0xa59   :  { %v1731_v28 = vsel %vm1730_vm5, %v1729_v26, %v1716_v21 }
 0xa5a   :  { %v1733_v29 = vsel %vm1732_vm6, %v1731_v28, %v1720_v27 }
 0xa5b   :  { %v1750_v34 = vpop.permute.xlu0 %1749 }
 0xac8   :  { %v1708_v30 = vpop.xlane.xlu1 %1707 }
 0xac9   :  { %v1735_v31 = vsel %vm1734_vm7, %v1733_v29, %v1708_v30 }
 0xaca   :  { %v1737_v9 = vsel %vm1736_vm8, %v1735_v31, %v1724_v22 }
 0xacb   :  { %v1739_v32 = vsel %vm1738_vm9, %v1737_v9, 0.0 }
 0xacc   :  { %1742 = vst.msk [vmem:[%s4217_s8] sm:$0x3] %vm1741_vm10, %v1739_v32  ;;  %v1744_v33 = vpop.permute.xlu1 %1743 }
 0xacd   :  { %1747 = vst.msk [vmem:[%s4217_s8] sm:$0x3] %vm1746_vm11, %v1744_v33 }
 0xace   :  { %1753 = vst.msk [vmem:[%s4217_s8] sm:$0x3] %vm1752_vm12, %v1750_v34 }

</bundles_post_ra>
